<compile_context>
chip_gen: v7x
topology: tpu7x:2x2x1
jax: 0.10.0
libtpu: 0.0.40
codegen_flags: <defaults>
</compile_context>

<pallas_src>
import jax
import jax.numpy as jnp
from jax import lax
from jax.experimental import pallas as pl
from jax.experimental.pallas import tpu as pltpu

KH = KW = 4            # ConvTranspose2d kernel_size=4
STRIDE = 2
PAD = 1
OUT_PAD_H, OUT_PAD_W = 1, 0   # output_padding=(1, 0)
EPS = 1e-5             # nn.InstanceNorm2d default eps


def _make_kernel(Cin, Cout, OH, OW):
    L = OH * OW
    C0 = KW - 1 - PAD           # left width-pad of the (virtual) dilated+padded input
    inv_n = 1.0 / float(L)

    def kernel(x_ref, w_ref, o_ref):
        # x_ref: (1, Cin, LEN)  flat dilated+padded input, row stride == OW
        # w_ref: (Cout, Cin*KH*KW) spatially-flipped ConvTranspose weights
        # o_ref: (1, Cout, L)   lane-dense output, raster order oh*OW+ow
        xf = x_ref[0]                                        # (Cin, LEN)

        col = lax.broadcasted_iota(jnp.int32, (1, L), 1)
        if (OW & (OW - 1)) == 0:
            ow = jnp.bitwise_and(col, OW - 1)                # column index within a row
        else:
            ow = col % OW

        # In-kernel im2col: each (kh, kw) tap is a contiguous flat slice, with the
        # few width-wrap-contaminated lanes masked to the (true) pad zeros.
        blocks = []
        for kh in range(KH):
            for kw in range(KW):
                base = OW * (kh + 1) + (kw - C0)             # >= OW - C0 >= 0
                blk = xf[:, base:base + L]                   # (Cin, L)
                lo = C0 - kw                                 # valid iff ow >= lo
                hi = OW - 1 + C0 - kw                        # valid iff ow <= hi
                if lo > 0 and hi < OW - 1:
                    blk = jnp.where((ow >= lo) & (ow <= hi), blk, 0.0)
                elif lo > 0:
                    blk = jnp.where(ow >= lo, blk, 0.0)
                elif hi < OW - 1:
                    blk = jnp.where(ow <= hi, blk, 0.0)
                blocks.append(blk)
        slab = jnp.concatenate(blocks, axis=0)               # (Cin*KH*KW, L), VMEM only

        # Whole transposed conv as one MXU matmul (f32-accurate).
        y = jnp.dot(w_ref[...], slab,
                    preferred_element_type=jnp.float32,
                    precision=lax.Precision.HIGHEST)         # (Cout, L)

        # InstanceNorm2d(affine=False), two-pass variance, + fused ReLU.
        mean = jnp.sum(y, axis=1, keepdims=True) * inv_n     # (Cout, 1)
        d = y - mean
        var = jnp.sum(d * d, axis=1, keepdims=True) * inv_n
        o_ref[0] = jnp.maximum(d * lax.rsqrt(var + EPS), 0.0).astype(o_ref.dtype)

    return kernel


def decoderconv_3_forward(x, weight, bias=None):
    """Forward of decoderconv_3.

    x:      (N, Cin, H, W)       float32, NCHW
    weight: (Cin, Cout, KH, KW)  PyTorch ConvTranspose2d weight layout
    bias:   (Cout,) -- accepted for API parity; mathematically cancelled by
            InstanceNorm2d(affine=False), so it is not used.
    returns (N, Cout, 2*H + 1, 2*W), NCHW
    """
    del bias  # exactly cancelled by the per-(n, c) mean subtraction of InstanceNorm
    N, Cin, H, W = x.shape
    Cout = weight.shape[1]
    OH = STRIDE * (H - 1) - 2 * PAD + KH + OUT_PAD_H   # = 2H + 1
    OW = STRIDE * (W - 1) - 2 * PAD + KW + OUT_PAD_W   # = 2W
    L = OH * OW
    K = Cin * KH * KW

    # ---- wrapper-side: ONE fused pad (stride-2 dilation + zero borders) ----
    # rows: 3 leading zeros (= top conv pad + 1 alignment row), interior 1, 4 trailing
    # cols: interior 1, 1 trailing zero  -> padded width == OW exactly (flat row stride OW)
    xpad = lax.pad(x.astype(jnp.float32), jnp.float32(0.0),
                   ((0, 0, 0), (0, 0, 0), (3, 4, 1), (0, 1, 1)))
    NR = xpad.shape[2]                                  # = 2H + 6
    assert xpad.shape[3] == OW
    xflat = xpad.reshape(N, Cin, NR * OW)               # free reshape
    LEN = NR * OW

    # (Cout, K) matmul LHS: spatially flipped weights, row order (kh, kw, ci)
    # matching the in-kernel slab construction.
    w_mat = jnp.transpose(weight[:, :, ::-1, ::-1], (1, 2, 3, 0)).reshape(Cout, K)
    w_mat = w_mat.astype(jnp.float32)

    out_flat = pl.pallas_call(
        _make_kernel(Cin, Cout, OH, OW),
        out_shape=jax.ShapeDtypeStruct((N, Cout, L), x.dtype),
        grid=(N,),
        in_specs=[
            pl.BlockSpec((1, Cin, LEN), lambda n: (n, 0, 0)),   # flat input, per image
            pl.BlockSpec((Cout, K), lambda n: (0, 0)),          # weights (revisited)
        ],
        out_specs=pl.BlockSpec((1, Cout, L), lambda n: (n, 0, 0)),
        compiler_params=pltpu.CompilerParams(dimension_semantics=("parallel",)),
    )(xflat, w_mat)

    return out_flat.reshape(N, Cout, OH, OW)             # free reshape to NCHW


def _reference(x, weight, bias):
    """Pure-JAX (XLA) reference for the same module, used only as a sanity check."""
    rhs = jnp.flip(jnp.transpose(weight, (1, 0, 2, 3)), axis=(2, 3))   # OIHW, flipped
    y = lax.conv_general_dilated(
        x, rhs, window_strides=(1, 1),
        padding=((KH - 1 - PAD, KH - 1 - PAD + OUT_PAD_H),
                 (KW - 1 - PAD, KW - 1 - PAD + OUT_PAD_W)),
        lhs_dilation=(STRIDE, STRIDE),
        dimension_numbers=('NCHW', 'OIHW', 'NCHW'),
        precision=lax.Precision.HIGHEST)
    y = y + bias[None, :, None, None]
    m = y.mean(axis=(2, 3), keepdims=True)
    v = ((y - m) ** 2).mean(axis=(2, 3), keepdims=True)
    return jnp.maximum((y - m) * lax.rsqrt(v + EPS), 0.0)


if __name__ == "__main__":
    in_ch, ou_ch = 4, 8
    N, H, W = 2, 16, 16

    key = jax.random.PRNGKey(0)
    kx, kw_, kb = jax.random.split(key, 3)
    x = jax.random.normal(kx, (N, in_ch, H, W), dtype=jnp.float32)
    # ConvTranspose2d weight layout: (in_ch, out_ch, kH, kW).
    bound = 1.0 / jnp.sqrt(in_ch * KH * KW)
    weight = jax.random.uniform(kw_, (in_ch, ou_ch, KH, KW), jnp.float32, -bound, bound)
    bias = jax.random.uniform(kb, (ou_ch,), jnp.float32, -bound, bound)

    fwd = jax.jit(decoderconv_3_forward)
    out = jax.block_until_ready(fwd(x, weight, bias))

    ref = _reference(x, weight, bias)
    assert out.shape == (N, ou_ch, 2 * H + 1, 2 * W), out.shape
    assert jnp.allclose(out, ref, atol=1e-4, rtol=1e-4), float(jnp.max(jnp.abs(out - ref)))
    print("KERNEL_OK")
</pallas_src>

<mosaic_0001>
module attributes {stable_mosaic.version = 11 : i64} {
  func.func @kernel(%arg0: i32, %arg1: memref<1x4x1216xf32, #tpu.memory_space<vmem>>, %arg2: memref<8x64xf32, #tpu.memory_space<vmem>>, %arg3: memref<1x8x1056xf32, #tpu.memory_space<vmem>>) attributes {dimension_semantics = [#tpu.dimension_semantics<parallel>], iteration_bounds = array<i64: 2>, scalar_prefetch = 0 : i64, scratch_operands = 0 : i64, tpu.core_type = #tpu.core_type<tc>, window_params = [{transform_indices = @transform_0, window_bounds = array<i64: 1, 4, 1216>}, {pipeline_mode = #tpu.pipeline_mode<synchronous>, transform_indices = @transform_1, window_bounds = array<i64: 8, 64>}, {transform_indices = @transform_2, window_bounds = array<i64: 1, 8, 1056>}]} {
    %c0 = arith.constant 0 : index
    %c0_0 = arith.constant 0 : index
    %c0_1 = arith.constant 0 : index
    %0 = vector.load %arg1[%c0, %c0_0, %c0_1] : memref<1x4x1216xf32, #tpu.memory_space<vmem>>, vector<1x4x1216xf32>
    %1 = vector.shape_cast %0 : vector<1x4x1216xf32> to vector<4x1216xf32>
    %2 = tpu.iota {dimensions = array<i32: 1>} : vector<1x1056xi32>
    %c31_i32 = arith.constant 31 : i32
    %3 = vector.broadcast %c31_i32 : i32 to vector<1x1056xi32>
    %4 = arith.andi %2, %3 : vector<1x1056xi32>
    %5 = vector.extract_strided_slice %1 {offsets = [0, 30], sizes = [4, 1056], strides = [1, 1]} : vector<4x1216xf32> to vector<4x1056xf32>
    %c2_i32 = arith.constant 2 : i32
    %6 = vector.broadcast %c2_i32 : i32 to vector<1x1056xi32>
    %7 = arith.cmpi sge, %4, %6 : vector<1x1056xi32>
    %cst = arith.constant 0.000000e+00 : f32
    %8 = vector.shape_cast %7 : vector<1x1056xi1> to vector<1x1056xi1>
    %9 = vector.broadcast %8 : vector<1x1056xi1> to vector<4x1056xi1>
    %10 = vector.broadcast %cst : f32 to vector<4x1056xf32>
    %11 = arith.select %9, %5, %10 : vector<4x1056xi1>, vector<4x1056xf32>
    %12 = vector.extract_strided_slice %1 {offsets = [0, 31], sizes = [4, 1056], strides = [1, 1]} : vector<4x1216xf32> to vector<4x1056xf32>
    %c1_i32 = arith.constant 1 : i32
    %13 = vector.broadcast %c1_i32 : i32 to vector<1x1056xi32>
    %14 = arith.cmpi sge, %4, %13 : vector<1x1056xi32>
    %cst_2 = arith.constant 0.000000e+00 : f32
    %15 = vector.shape_cast %14 : vector<1x1056xi1> to vector<1x1056xi1>
    %16 = vector.broadcast %15 : vector<1x1056xi1> to vector<4x1056xi1>
    %17 = vector.broadcast %cst_2 : f32 to vector<4x1056xf32>
    %18 = arith.select %16, %12, %17 : vector<4x1056xi1>, vector<4x1056xf32>
    %19 = vector.extract_strided_slice %1 {offsets = [0, 32], sizes = [4, 1056], strides = [1, 1]} : vector<4x1216xf32> to vector<4x1056xf32>
    %20 = vector.extract_strided_slice %1 {offsets = [0, 33], sizes = [4, 1056], strides = [1, 1]} : vector<4x1216xf32> to vector<4x1056xf32>
    %c30_i32 = arith.constant 30 : i32
    %21 = vector.broadcast %c30_i32 : i32 to vector<1x1056xi32>
    %22 = arith.cmpi sle, %4, %21 : vector<1x1056xi32>
    %cst_3 = arith.constant 0.000000e+00 : f32
    %23 = vector.shape_cast %22 : vector<1x1056xi1> to vector<1x1056xi1>
    %24 = vector.broadcast %23 : vector<1x1056xi1> to vector<4x1056xi1>
    %25 = vector.broadcast %cst_3 : f32 to vector<4x1056xf32>
    %26 = arith.select %24, %20, %25 : vector<4x1056xi1>, vector<4x1056xf32>
    %27 = vector.extract_strided_slice %1 {offsets = [0, 62], sizes = [4, 1056], strides = [1, 1]} : vector<4x1216xf32> to vector<4x1056xf32>
    %c2_i32_4 = arith.constant 2 : i32
    %28 = vector.broadcast %c2_i32_4 : i32 to vector<1x1056xi32>
    %29 = arith.cmpi sge, %4, %28 : vector<1x1056xi32>
    %cst_5 = arith.constant 0.000000e+00 : f32
    %30 = vector.shape_cast %29 : vector<1x1056xi1> to vector<1x1056xi1>
    %31 = vector.broadcast %30 : vector<1x1056xi1> to vector<4x1056xi1>
    %32 = vector.broadcast %cst_5 : f32 to vector<4x1056xf32>
    %33 = arith.select %31, %27, %32 : vector<4x1056xi1>, vector<4x1056xf32>
    %34 = vector.extract_strided_slice %1 {offsets = [0, 63], sizes = [4, 1056], strides = [1, 1]} : vector<4x1216xf32> to vector<4x1056xf32>
    %c1_i32_6 = arith.constant 1 : i32
    %35 = vector.broadcast %c1_i32_6 : i32 to vector<1x1056xi32>
    %36 = arith.cmpi sge, %4, %35 : vector<1x1056xi32>
    %cst_7 = arith.constant 0.000000e+00 : f32
    %37 = vector.shape_cast %36 : vector<1x1056xi1> to vector<1x1056xi1>
    %38 = vector.broadcast %37 : vector<1x1056xi1> to vector<4x1056xi1>
    %39 = vector.broadcast %cst_7 : f32 to vector<4x1056xf32>
    %40 = arith.select %38, %34, %39 : vector<4x1056xi1>, vector<4x1056xf32>
    %41 = vector.extract_strided_slice %1 {offsets = [0, 64], sizes = [4, 1056], strides = [1, 1]} : vector<4x1216xf32> to vector<4x1056xf32>
    %42 = vector.extract_strided_slice %1 {offsets = [0, 65], sizes = [4, 1056], strides = [1, 1]} : vector<4x1216xf32> to vector<4x1056xf32>
    %c30_i32_8 = arith.constant 30 : i32
    %43 = vector.broadcast %c30_i32_8 : i32 to vector<1x1056xi32>
    %44 = arith.cmpi sle, %4, %43 : vector<1x1056xi32>
    %cst_9 = arith.constant 0.000000e+00 : f32
    %45 = vector.shape_cast %44 : vector<1x1056xi1> to vector<1x1056xi1>
    %46 = vector.broadcast %45 : vector<1x1056xi1> to vector<4x1056xi1>
    %47 = vector.broadcast %cst_9 : f32 to vector<4x1056xf32>
    %48 = arith.select %46, %42, %47 : vector<4x1056xi1>, vector<4x1056xf32>
    %49 = vector.extract_strided_slice %1 {offsets = [0, 94], sizes = [4, 1056], strides = [1, 1]} : vector<4x1216xf32> to vector<4x1056xf32>
    %c2_i32_10 = arith.constant 2 : i32
    %50 = vector.broadcast %c2_i32_10 : i32 to vector<1x1056xi32>
    %51 = arith.cmpi sge, %4, %50 : vector<1x1056xi32>
    %cst_11 = arith.constant 0.000000e+00 : f32
    %52 = vector.shape_cast %51 : vector<1x1056xi1> to vector<1x1056xi1>
    %53 = vector.broadcast %52 : vector<1x1056xi1> to vector<4x1056xi1>
    %54 = vector.broadcast %cst_11 : f32 to vector<4x1056xf32>
    %55 = arith.select %53, %49, %54 : vector<4x1056xi1>, vector<4x1056xf32>
    %56 = vector.extract_strided_slice %1 {offsets = [0, 95], sizes = [4, 1056], strides = [1, 1]} : vector<4x1216xf32> to vector<4x1056xf32>
    %c1_i32_12 = arith.constant 1 : i32
    %57 = vector.broadcast %c1_i32_12 : i32 to vector<1x1056xi32>
    %58 = arith.cmpi sge, %4, %57 : vector<1x1056xi32>
    %cst_13 = arith.constant 0.000000e+00 : f32
    %59 = vector.shape_cast %58 : vector<1x1056xi1> to vector<1x1056xi1>
    %60 = vector.broadcast %59 : vector<1x1056xi1> to vector<4x1056xi1>
    %61 = vector.broadcast %cst_13 : f32 to vector<4x1056xf32>
    %62 = arith.select %60, %56, %61 : vector<4x1056xi1>, vector<4x1056xf32>
    %63 = vector.extract_strided_slice %1 {offsets = [0, 96], sizes = [4, 1056], strides = [1, 1]} : vector<4x1216xf32> to vector<4x1056xf32>
    %64 = vector.extract_strided_slice %1 {offsets = [0, 97], sizes = [4, 1056], strides = [1, 1]} : vector<4x1216xf32> to vector<4x1056xf32>
    %c30_i32_14 = arith.constant 30 : i32
    %65 = vector.broadcast %c30_i32_14 : i32 to vector<1x1056xi32>
    %66 = arith.cmpi sle, %4, %65 : vector<1x1056xi32>
    %cst_15 = arith.constant 0.000000e+00 : f32
    %67 = vector.shape_cast %66 : vector<1x1056xi1> to vector<1x1056xi1>
    %68 = vector.broadcast %67 : vector<1x1056xi1> to vector<4x1056xi1>
    %69 = vector.broadcast %cst_15 : f32 to vector<4x1056xf32>
    %70 = arith.select %68, %64, %69 : vector<4x1056xi1>, vector<4x1056xf32>
    %71 = vector.extract_strided_slice %1 {offsets = [0, 126], sizes = [4, 1056], strides = [1, 1]} : vector<4x1216xf32> to vector<4x1056xf32>
    %c2_i32_16 = arith.constant 2 : i32
    %72 = vector.broadcast %c2_i32_16 : i32 to vector<1x1056xi32>
    %73 = arith.cmpi sge, %4, %72 : vector<1x1056xi32>
    %cst_17 = arith.constant 0.000000e+00 : f32
    %74 = vector.shape_cast %73 : vector<1x1056xi1> to vector<1x1056xi1>
    %75 = vector.broadcast %74 : vector<1x1056xi1> to vector<4x1056xi1>
    %76 = vector.broadcast %cst_17 : f32 to vector<4x1056xf32>
    %77 = arith.select %75, %71, %76 : vector<4x1056xi1>, vector<4x1056xf32>
    %78 = vector.extract_strided_slice %1 {offsets = [0, 127], sizes = [4, 1056], strides = [1, 1]} : vector<4x1216xf32> to vector<4x1056xf32>
    %c1_i32_18 = arith.constant 1 : i32
    %79 = vector.broadcast %c1_i32_18 : i32 to vector<1x1056xi32>
    %80 = arith.cmpi sge, %4, %79 : vector<1x1056xi32>
    %cst_19 = arith.constant 0.000000e+00 : f32
    %81 = vector.shape_cast %80 : vector<1x1056xi1> to vector<1x1056xi1>
    %82 = vector.broadcast %81 : vector<1x1056xi1> to vector<4x1056xi1>
    %83 = vector.broadcast %cst_19 : f32 to vector<4x1056xf32>
    %84 = arith.select %82, %78, %83 : vector<4x1056xi1>, vector<4x1056xf32>
    %85 = vector.extract_strided_slice %1 {offsets = [0, 128], sizes = [4, 1056], strides = [1, 1]} : vector<4x1216xf32> to vector<4x1056xf32>
    %86 = vector.extract_strided_slice %1 {offsets = [0, 129], sizes = [4, 1056], strides = [1, 1]} : vector<4x1216xf32> to vector<4x1056xf32>
    %c30_i32_20 = arith.constant 30 : i32
    %87 = vector.broadcast %c30_i32_20 : i32 to vector<1x1056xi32>
    %88 = arith.cmpi sle, %4, %87 : vector<1x1056xi32>
    %cst_21 = arith.constant 0.000000e+00 : f32
    %89 = vector.shape_cast %88 : vector<1x1056xi1> to vector<1x1056xi1>
    %90 = vector.broadcast %89 : vector<1x1056xi1> to vector<4x1056xi1>
    %91 = vector.broadcast %cst_21 : f32 to vector<4x1056xf32>
    %92 = arith.select %90, %86, %91 : vector<4x1056xi1>, vector<4x1056xf32>
    %93 = tpu.concatenate %11, %18, %19, %26, %33, %40, %41, %48, %55, %62, %63, %70, %77, %84, %85, %92 in 0 : vector<4x1056xf32>, vector<4x1056xf32>, vector<4x1056xf32>, vector<4x1056xf32>, vector<4x1056xf32>, vector<4x1056xf32>, vector<4x1056xf32>, vector<4x1056xf32>, vector<4x1056xf32>, vector<4x1056xf32>, vector<4x1056xf32>, vector<4x1056xf32>, vector<4x1056xf32>, vector<4x1056xf32>, vector<4x1056xf32>, vector<4x1056xf32> -> vector<64x1056xf32>
    %c0_22 = arith.constant 0 : index
    %c0_23 = arith.constant 0 : index
    %94 = vector.load %arg2[%c0_22, %c0_23] : memref<8x64xf32, #tpu.memory_space<vmem>>, vector<8x64xf32>
    %cst_24 = arith.constant dense<0.000000e+00> : vector<8x1056xf32>
    %95 = tpu.matmul %94, %93, %cst_24 {dimension_numbers = #tpu.dot_dimension_numbers<[1], [0], [0], [1], [0, 0, 1, 1], [], []>, precision = #tpu.contract_precision<fp32>} : vector<8x64xf32>, vector<64x1056xf32>, vector<8x1056xf32> -> vector<8x1056xf32>
    %cst_25 = arith.constant dense<0.000000e+00> : vector<8xf32>
    %96 = vector.multi_reduction <add>, %95, %cst_25 [1] : vector<8x1056xf32> to vector<8xf32>
    %97 = vector.shape_cast %96 : vector<8xf32> to vector<8x1xf32>
    %cst_26 = arith.constant 9.46969725E-4 : f32
    %98 = vector.broadcast %cst_26 : f32 to vector<8x1xf32>
    %99 = arith.mulf %97, %98 : vector<8x1xf32>
    %100 = vector.broadcast %99 : vector<8x1xf32> to vector<8x1056xf32>
    %101 = arith.subf %95, %100 : vector<8x1056xf32>
    %102 = arith.mulf %101, %101 : vector<8x1056xf32>
    %cst_27 = arith.constant dense<0.000000e+00> : vector<8xf32>
    %103 = vector.multi_reduction <add>, %102, %cst_27 [1] : vector<8x1056xf32> to vector<8xf32>
    %104 = vector.shape_cast %103 : vector<8xf32> to vector<8x1xf32>
    %cst_28 = arith.constant 9.46969725E-4 : f32
    %105 = vector.broadcast %cst_28 : f32 to vector<8x1xf32>
    %106 = arith.mulf %104, %105 : vector<8x1xf32>
    %cst_29 = arith.constant 9.99999974E-6 : f32
    %107 = vector.broadcast %cst_29 : f32 to vector<8x1xf32>
    %108 = arith.addf %106, %107 : vector<8x1xf32>
    %109 = math.rsqrt %108 : vector<8x1xf32>
    %110 = vector.broadcast %109 : vector<8x1xf32> to vector<8x1056xf32>
    %111 = arith.mulf %101, %110 : vector<8x1056xf32>
    %cst_30 = arith.constant 0.000000e+00 : f32
    %112 = vector.broadcast %cst_30 : f32 to vector<8x1056xf32>
    %113 = arith.maximumf %111, %112 : vector<8x1056xf32>
    %c0_31 = arith.constant 0 : index
    %c0_32 = arith.constant 0 : index
    %c0_33 = arith.constant 0 : index
    %114 = vector.load %arg3[%c0_31, %c0_32, %c0_33] : memref<1x8x1056xf32, #tpu.memory_space<vmem>>, vector<1x8x1056xf32>
    %115 = vector.shape_cast %114 : vector<1x8x1056xf32> to vector<8x1056xf32>
    %116 = vector.shape_cast %113 : vector<8x1056xf32> to vector<1x8x1056xf32>
    tpu.vector_store %arg3[%c0_31, %c0_32, %c0_33], %116 {strides = array<i32>} : memref<1x8x1056xf32, #tpu.memory_space<vmem>>, vector<1x8x1056xf32>,
    return
  }
  func.func @transform_0(%arg0: i32) -> (i32, i32, i32) {
    %c0_i32 = arith.constant 0 : i32
    %c0_i32_0 = arith.constant 0 : i32
    %c0_i32_1 = arith.constant 0 : i32
    return %arg0, %c0_i32, %c0_i32_0 : i32, i32, i32
  }
  func.func @transform_1(%arg0: i32) -> (i32, i32) {
    %c0_i32 = arith.constant 0 : i32
    %c0_i32_0 = arith.constant 0 : i32
    %c0_i32_1 = arith.constant 0 : i32
    return %c0_i32, %c0_i32_0 : i32, i32
  }
  func.func @transform_2(%arg0: i32) -> (i32, i32, i32) {
    %c0_i32 = arith.constant 0 : i32
    %c0_i32_0 = arith.constant 0 : i32
    %c0_i32_1 = arith.constant 0 : i32
    return %arg0, %c0_i32, %c0_i32_0 : i32, i32, i32
  }
}

</mosaic_0001>

<bundles_post_ra>
// kernel: decoderconv_3_forward.1
= control target key start
LH: loop header
LB: loop body
LE: loop exit
PB: predicated region body
PF: predicated region fallthrough
CT: control target
= control target key end

     0   :  { %s5227_s9 = smov 0   ;;  %s7556_s0 = inlined_call_operand.vmem [shape: f32[2,4,1216], index: 0, kind: input, shape index: {}]   ;;  %s7557_s1 = inlined_call_operand.vmem [shape: f32[8,64], index: 1, kind: input, shape index: {}]   ;;  %s7558_s2 = inlined_call_operand.vmem [shape: f32[2,8,1056], index: 2, kind: output, shape index: {}]  }
   0x1 LB: > { %s4465_s10 = sadd.s32 4294967295, %s5192_s9   ;;  %p4469_p0 = scmp.ge.s32.totalorder %s5192_s9, 1  ;;  %s5192_s9 = sphi %s5227_s9, %s12_s9  }
   0x2   : > { %p112_p1 = scmp.lt.s32.totalorder %s5192_s9, 3 }
   0x4   : > { %p113_p2 = pnand %p4469_p0, %p112_p1 }
   0x6   : > { %116 = sbr.rel (%p113_p2) target bundleno = 1083 (0x43b), region = 28 }
   0xd   : > { %p134_p3 = scmp.lt.s32.totalorder %s4465_s10, 1  ;;  %s5194_s15 = smov 95   ;;  %v7564_v4 = vmov 0.0   ;;  %v149_v8 = vlaneseq  ;;  %vm7598_vm0 = vcmask 793600   ;;  %vm7600_vm2 = vcmask 801792  }
   0xe   : > { %s5195_s16 = smov 97   ;;  %s5196_s17 = smov 98   ;;  %1294 = vmatprep.mubr.f32.mxu1 %v7564_v4  ;;  %1643 = vmatprep.mubr.f32.mxu0 %v7564_v4  ;;  %vm7601_vm3 = vcmask 777216   ;;  %vm1137_vm5 = vcmask 1043456   ;;  %vm7603_vm7 = vcmask 785408   ;;  %vm7561_vm11 = vcmask 531456  }
   0xf   : > { %s7995_s10 = smov (!%p134_p3, %s4465_s10), 1  ;;  %s5197_s18 = smov 96   ;;  %v5363_v9 = vand.u32 127, %v149_v8  ;;  %vm7560_vm12 = vcmask 515072   ;;  %vm7559_vm13 = vcmask 539648   ;;  %vm943_vm14 = vcmask 523264  }
  0x10   : > { %s5148_s11 = smul.u32 40, %s7995_s10  ;;  %s5198_s19 = smov 65   ;;  %vm7597_vm15 = vcmask 269312  }
  0x11   : > { %s5199_s20 = smov 63   ;;  %s5200_s21 = smov 66   ;;  %v151_v10 = vadd.s32 128, %v5363_v9  ;;  %v5409_v27 = vand.u32 31, %v5363_v9 }
  0x12   : > { %s5241_s14 = scalar_lea.vmem %s7556_s0, %s5148_s11  ;;  %s5201_s22 = smov 64  }
  0x13   : > { %v5244_v0 = vld [vmem:[%s5241_s14 + $0x8] sm:$0xff]  ;;  %v144_v1 = vld [vmem:[%s5241_s14] sm:$0xff]  ;;  %s5202_s23 = smov 33   ;;  %s5203_s24 = smov 31   ;;  %v5334_v5 = vld [vmem:[%s5241_s14 + $0x10] sm:$0xff]  ;;  %v5378_v13 = vand.u32 31, %v151_v10 }
  0x14   : > { %352 = vrot.lane.b32.xlu1 %v5244_v0, %s5194_s15  ;;  %280 = vrot.lane.b32.xlu0 %v5244_v0, %s5195_s16  ;;  %v5252_v2 = vcombine.high %v144_v1, %v144_v1  ;;  %s5204_s25 = smov 34   ;;  %s5205_s26 = smov 32   ;;  %v5316_v3 = vcombine.high %v5244_v0, %v5244_v0  ;;  %v5346_v6 = vcombine.high %v5334_v5, %v5334_v5  ;;  %v5353_v7 = vld [vmem:[%s5241_s14 + $0x18] sm:$0xff]  ;;  %vm249_vm8 = vcmp.ge.s32.totalorder %v5409_v27, 1 }
  0x15   : > { %s5206_s27 = smov 1   ;;  %s5207_s28 = smov 127   ;;  %vm250_vm1 = vcmp.ge.s32.totalorder %v5378_v13, 1  ;;  %vm169_vm4 = vcmp.ge.s32.totalorder %v5378_v13, 2  ;;  %vm322_vm6 = vcmp.le.s32.totalorder %v5378_v13, 30  ;;  %vm321_vm9 = vcmp.le.s32.totalorder %v5409_v27, 30 }
  0x16   : > { %7683 = vst [vmem:[#allocation2_spill] sm:$0xff] %v5316_v3  ;;  %s5208_s29 = smov 2   ;;  %7684 = vst [vmem:[#allocation3_spill] sm:$0xff] %v5346_v6  ;;  %vm168_vm10 = vcmp.ge.s32.totalorder %v5409_v27, 2  ;;  %s5149_s4 = smul.u32 72, %s7995_s10 }
  0x18   : > { %348 = vrot.lane.b32.xlu1 %v144_v1, %s5194_s15  ;;  %276 = vrot.lane.b32.xlu0 %v144_v1, %s5195_s16  ;;  %s143_s7 = scalar_lea.vmem %s7558_s2, %s5149_s4 }
  0x1c   : > { %350 = vrot.lane.b32.xlu1 %v5252_v2, %s5194_s15  ;;  %278 = vrot.lane.b32.xlu0 %v5252_v2, %s5195_s16 }
  0x20   : > { %208 = vrot.lane.b32.xlu1 %v5244_v0, %s5196_s17  ;;  %206 = vrot.lane.b32.xlu0 %v5252_v2, %s5196_s17 }
  0x24   : > { %837 = vrot.lane.b32.xlu1 %v5252_v2, %s5197_s18  ;;  %204 = vrot.lane.b32.xlu0 %v144_v1, %s5196_s17 }
  0x28   : > { %440 = vrot.lane.b32.xlu1 %v5252_v2, %s5198_s19  ;;  %839 = vrot.lane.b32.xlu0 %v5244_v0, %s5197_s18 }
  0x2c   : > { %485 = vrot.lane.b32.xlu1 %v5252_v2, %s5199_s20  ;;  %442 = vrot.lane.b32.xlu0 %v5244_v0, %s5198_s19 }
  0x30   : > { %835 = vrot.lane.b32.xlu1 %v144_v1, %s5197_s18  ;;  %487 = vrot.lane.b32.xlu0 %v5244_v0, %s5199_s20 }
  0x34   : > { %483 = vrot.lane.b32.xlu1 %v144_v1, %s5199_s20  ;;  %438 = vrot.lane.b32.xlu0 %v144_v1, %s5198_s19 }
  0x38   : > { %397 = vrot.lane.b32.xlu1 %v5244_v0, %s5200_s21  ;;  %395 = vrot.lane.b32.xlu0 %v5252_v2, %s5200_s21 }
  0x3c   : > { %927 = vrot.lane.b32.xlu1 %v5252_v2, %s5201_s22  ;;  %393 = vrot.lane.b32.xlu0 %v144_v1, %s5200_s21 }
  0x40   : > { %575 = vrot.lane.b32.xlu1 %v5252_v2, %s5202_s23  ;;  %929 = vrot.lane.b32.xlu0 %v5244_v0, %s5201_s22 }
  0x44   : > { %621 = vrot.lane.b32.xlu1 %v5252_v2, %s5203_s24  ;;  %577 = vrot.lane.b32.xlu0 %v5244_v0, %s5202_s23 }
  0x48   : > { %925 = vrot.lane.b32.xlu1 %v144_v1, %s5201_s22  ;;  %623 = vrot.lane.b32.xlu0 %v5244_v0, %s5203_s24 }
  0x4c   : > { %619 = vrot.lane.b32.xlu1 %v144_v1, %s5203_s24  ;;  %573 = vrot.lane.b32.xlu0 %v144_v1, %s5202_s23 }
  0x50   : > { %532 = vrot.lane.b32.xlu1 %v5244_v0, %s5204_s25  ;;  %530 = vrot.lane.b32.xlu0 %v5252_v2, %s5204_s25 }
  0x54   : > { %1017 = vrot.lane.b32.xlu1 %v5252_v2, %s5205_s26  ;;  %528 = vrot.lane.b32.xlu0 %v144_v1, %s5204_s25 }
  0x58   : > { %717 = vrot.lane.b32.xlu1 %v5252_v2, %s5206_s27  ;;  %1019 = vrot.lane.b32.xlu0 %v5244_v0, %s5205_s26 }
  0x5c   : > { %765 = vrot.lane.b32.xlu1 %v5244_v0, %s5207_s28  ;;  %719 = vrot.lane.b32.xlu0 %v5244_v0, %s5206_s27 }
  0x60   : > { %1015 = vrot.lane.b32.xlu1 %v144_v1, %s5205_s26  ;;  %767 = vrot.lane.b32.xlu0 %v5316_v3, %s5207_s28 }
  0x64   : > { %763 = vrot.lane.b32.xlu1 %v5252_v2, %s5207_s28  ;;  %715 = vrot.lane.b32.xlu0 %v144_v1, %s5206_s27 }
  0x68   : > { %671 = vrot.lane.b32.xlu1 %v5244_v0, %s5208_s29  ;;  %669 = vrot.lane.b32.xlu0 %v5252_v2, %s5208_s29 }
  0x6c   : > { %282 = vrot.lane.b32.xlu1 %v5316_v3, %s5195_s16  ;;  %667 = vrot.lane.b32.xlu0 %v144_v1, %s5208_s29 }
  0x70   : > { %354 = vrot.lane.b32.xlu1 %v5316_v3, %s5194_s15  ;;  %284 = vrot.lane.b32.xlu0 %v5334_v5, %s5195_s16 }
  0x74   : > { %210 = vrot.lane.b32.xlu1 %v5316_v3, %s5196_s17  ;;  %356 = vrot.lane.b32.xlu0 %v5334_v5, %s5194_s15 }
  0x78   : > { %286 = vrot.lane.b32.xlu1 %v5346_v6, %s5195_s16  ;;  %212 = vrot.lane.b32.xlu0 %v5334_v5, %s5196_s17 }
  0x7c   : > { %358 = vrot.lane.b32.xlu1 %v5346_v6, %s5194_s15  ;;  %288 = vrot.lane.b32.xlu0 %v5353_v7, %s5195_s16 }
  0x80   : > { %841 = vrot.lane.b32.xlu1 %v5316_v3, %s5197_s18  ;;  %360 = vrot.lane.b32.xlu0 %v5353_v7, %s5194_s15 }
  0x84   : > { %444 = vrot.lane.b32.xlu1 %v5316_v3, %s5198_s19  ;;  %843 = vrot.lane.b32.xlu0 %v5334_v5, %s5197_s18 }
  0x86   : > { %v5370_v11 = vpop.permute.xlu1 %352  ;;  %v5372_v12 = vpop.permute.xlu0 %280 }
  0x88   : > { %489 = vrot.lane.b32.xlu1 %v5316_v3, %s5199_s20  ;;  %446 = vrot.lane.b32.xlu0 %v5334_v5, %s5198_s19 }
  0x8a   : > { %v349_v14 = vpop.permute.xlu1 %348  ;;  %v277_v15 = vpop.permute.xlu0 %276 }
  0x8c   : > { %214 = vrot.lane.b32.xlu1 %v5346_v6, %s5196_s17  ;;  %491 = vrot.lane.b32.xlu0 %v5334_v5, %s5199_s20 }
  0x8e   : > { %v351_v16 = vpop.permute.xlu1 %350  ;;  %v279_v17 = vpop.permute.xlu0 %278 }
  0x8f   : > { %v296_v18 = vsel %vm7598_vm0, %v279_v17, %v5372_v12  ;;  %v368_v24 = vsel %vm7601_vm3, %v351_v16, %v5370_v11  ;;  %v295_v33 = vsel %vm7598_vm0, %v277_v15, %v279_v17  ;;  %v367_v38 = vsel %vm7601_vm3, %v349_v14, %v351_v16 }
  0x90   : > { %v313_v19 = vsel %vm250_vm1, %v296_v18, 0.0  ;;  %399 = vrot.lane.b32.xlu1 %v5316_v3, %s5200_s21  ;;  %216 = vrot.lane.b32.xlu0 %v5353_v7, %s5196_s17  ;;  %v385_v31 = vsel %vm322_vm6, %v368_v24, 0.0  ;;  %v312_v41 = vsel %vm249_vm8, %v295_v33, 0.0  ;;  %v384_v46 = vsel %vm321_vm9, %v367_v38, 0.0 }
  0x91   : > { %v818_v22 = vrot.slane %v313_v19, 4  ;;  %v881_v32 = vrot.slane %v385_v31, 4  ;;  %v817_v50 = vrot.slane %v312_v41, 4  ;;  %v880_v53 = vrot.slane %v384_v46, 4 }
  0x92   : > { %v5394_v20 = vpop.permute.xlu1 %208  ;;  %v207_v21 = vpop.permute.xlu0 %206 }
  0x93   : > { %v224_v23 = vsel %vm7600_vm2, %v207_v21, %v5394_v20 }
  0x94   : > { %v241_v25 = vsel %vm169_vm4, %v224_v23, 0.0  ;;  %845 = vrot.lane.b32.xlu1 %v5346_v6, %s5197_s18  ;;  %401 = vrot.lane.b32.xlu0 %v5334_v5, %s5200_s21 }
  0x95   : > { %v1139_v26 = vsel %vm1137_vm5, %v241_v25, %v818_v22 }
  0x96   : > { %v838_v28 = vpop.permute.xlu1 %837  ;;  %v205_v29 = vpop.permute.xlu0 %204  ;;  %v1214_v30 = vand.u32 4294901760, %v1139_v26 }
  0x97   : > { %v223_v39 = vsel %vm7600_vm2, %v205_v29, %v207_v21 }
  0x98   : > { %448 = vrot.lane.b32.xlu1 %v5346_v6, %s5198_s19  ;;  %847 = vrot.lane.b32.xlu0 %v5353_v7, %s5197_s18  ;;  %v5423_v36 = vsub.f32 %v1139_v26, %v1214_v30  ;;  %v240_v47 = vsel %vm168_vm10, %v223_v39, 0.0 }
  0x99   : > { %v5461_v54 = vsel %vm1137_vm5, %v240_v47, %v817_v50 }
  0x9a   : > { %v5419_v34 = vpop.permute.xlu1 %440  ;;  %v5421_v35 = vpop.permute.xlu0 %839  ;;  %v1308_v45 = vand.u32 4294901760, %v5423_v36  ;;  %v1216_v62 = vand.u32 4294901760, %v5461_v54 }
  0x9b   : > { %v855_v37 = vsel %vm7603_vm7, %v838_v28, %v5421_v35 }
  0x9c   : > { %v1148_v40 = vsel %vm1137_vm5, %v855_v37, %v881_v32  ;;  %493 = vrot.lane.b32.xlu1 %v5346_v6, %s5199_s20  ;;  %450 = vrot.lane.b32.xlu0 %v5353_v7, %s5198_s19  ;;  %v1309_v57 = vsub.f32 %v5423_v36, %v1308_v45 }
  0x9d   : > { %v1218_v42 = vand.u32 4294901760, %v1148_v40 }
  0x9e   : > { %v5438_v43 = vpop.permute.xlu1 %485  ;;  %v5440_v44 = vpop.permute.xlu0 %442  ;;  %v1310_v14 = vand.u32 4294901760, %v1309_v57 }
  0x9f   : > { %7685 = vst [vmem:[#allocation4_spill] sm:$0xff] %v5440_v44  ;;  %v5447_v48 = vpack.c.bf16 %v1218_v42, %v1214_v30  ;;  %v5449_v49 = vsub.f32 %v1148_v40, %v1218_v42  ;;  %v458_v17 = vsel %vm7561_vm11, %v5419_v34, %v5440_v44 }
  0xa0   : > { %931 = vrot.lane.b32.xlu1 %v5316_v3, %s5201_s22  ;;  %495 = vrot.lane.b32.xlu0 %v5353_v7, %s5199_s20  ;;  %v475_v23 = vsel %vm250_vm1, %v458_v17, 0.0 }
  0xa1   : > { %4643 = vmatprep.subr.bf16.mxu1 %v5447_v48  ;;  %4691 = vmatprep.subr.bf16.mxu0 %v5447_v48  ;;  %v1320_v51 = vand.u32 4294901760, %v5449_v49  ;;  %v908_v29 = vrot.slane %v475_v23, 4 }
  0xa2   : > { %v836_v55 = vpop.permute.xlu1 %835  ;;  %v5463_v56 = vpop.permute.xlu0 %487 }
  0xa3   : > { %7686 = vst [vmem:[#allocation5_spill] sm:$0xff] %v5463_v56  ;;  %v854_v58 = vsel %vm7603_vm7, %v836_v55, %v838_v28  ;;  %v1321_v59 = vsub.f32 %v5449_v49, %v1320_v51  ;;  %v5468_v60 = vpack.c.bf16 %v1320_v51, %v1308_v45  ;;  %v503_v21 = vsel %vm7560_vm12, %v5438_v43, %v5463_v56 }
  0xa4   : > { %v5471_v61 = vsel %vm1137_vm5, %v854_v58, %v880_v53  ;;  %579 = vrot.lane.b32.xlu1 %v5316_v3, %s5202_s23  ;;  %933 = vrot.lane.b32.xlu0 %v5334_v5, %s5201_s22  ;;  %v520_v26 = vsel %vm322_vm6, %v503_v21, 0.0 }
  0xa5   : > { %v1220_v63 = vand.u32 4294901760, %v5471_v61  ;;  %v1322_v1 = vand.u32 4294901760, %v1321_v59  ;;  %v971_v30 = vrot.slane %v520_v26, 4 }
  0xa6   : > { %v484_v8 = vpop.permute.xlu1 %483  ;;  %v439_v10 = vpop.permute.xlu0 %438 }
  0xa7   : > { %v5483_v15 = vpack.c.bf16 %v1220_v63, %v1216_v62  ;;  %v5489_v16 = vpack.c.bf16 %v1322_v1, %v1310_v14  ;;  %v457_v31 = vsel %vm7561_vm11, %v439_v10, %v5419_v34  ;;  %v502_v39 = vsel %vm7560_vm12, %v484_v8, %v5438_v43 }
  0xa8   : > { %625 = vrot.lane.b32.xlu1 %v5316_v3, %s5203_s24  ;;  %581 = vrot.lane.b32.xlu0 %v5334_v5, %s5202_s23  ;;  %v474_v34 = vsel %vm249_vm8, %v457_v31, 0.0  ;;  %v519_v47 = vsel %vm321_vm9, %v502_v39, 0.0  ;;  %vm7563_vm12 = vcmask 277504   ;;  %vm7596_vm11 = vcmask 261120  }
  0xa9   : > { %4645 = vmatpush1.bf16.msra.mxu1 %v5483_v15  ;;  %4693 = vmatpush1.bf16.msra.mxu0 %v5483_v15  ;;  %v907_v53 = vrot.slane %v474_v34, 4  ;;  %v970_v55 = vrot.slane %v519_v47, 4 }
  0xaa   : > { %v5496_v18 = vpop.permute.xlu1 %397  ;;  %v396_v19 = vpop.permute.xlu0 %395 }
  0xab   : > { %7687 = vst [vmem:[#allocation6_spill] sm:$0xff] %v5496_v18  ;;  %v413_v22 = vsel %vm7559_vm13, %v396_v19, %v5496_v18 }
  0xac   : > { %403 = vrot.lane.b32.xlu1 %v5346_v6, %s5200_s21  ;;  %627 = vrot.lane.b32.xlu0 %v5334_v5, %s5203_s24  ;;  %v430_v28 = vsel %vm169_vm4, %v413_v22, 0.0 }
  0xad   : > { %v5520_v32 = vsel %vm1137_vm5, %v430_v28, %v908_v29  ;;  %v1210_v28 = vld [vmem:[%s7557_s1] sm:$0xff] }
  0xae   : > { %v928_v24 = vpop.permute.xlu1 %927  ;;  %v394_v25 = vpop.permute.xlu0 %393  ;;  %v1222_v42 = vand.u32 4294901760, %v5520_v32 }
  0xaf   : > { %v412_v40 = vsel %vm7559_vm13, %v394_v25, %v396_v19  ;;  %vm7562_vm13 = vcmask 252928  }
  0xb0   : > { %534 = vrot.lane.b32.xlu1 %v5316_v3, %s5204_s25  ;;  %405 = vrot.lane.b32.xlu0 %v5353_v7, %s5200_s21  ;;  %v429_v50 = vsel %vm168_vm10, %v412_v40, 0.0  ;;  %v1212_v40 = vsel %vm943_vm14, %v1210_v28, 0 }
  0xb1   : > { %v5559_v57 = vsel %vm1137_vm5, %v429_v50, %v907_v53 }
  0xb2   : > { %v576_v33 = vpop.permute.xlu1 %575  ;;  %v5522_v37 = vpop.permute.xlu0 %929  ;;  %v1224_v10 = vand.u32 4294901760, %v5559_v57 }
  0xb3   : > { %7688 = vst [vmem:[#allocation7_spill] sm:$0xff] %v5522_v37  ;;  %v945_v38 = vsel %vm943_vm14, %v928_v24, %v5522_v37 }
  0xb4   : > { %v5530_v41 = vsel %vm1137_vm5, %v945_v38, %v971_v30  ;;  %935 = vrot.lane.b32.xlu1 %v5346_v6, %s5201_s22  ;;  %536 = vrot.lane.b32.xlu0 %v5334_v5, %s5204_s25 }
  0xb5   : > { %v1226_v45 = vand.u32 4294901760, %v5530_v41 }
  0xb6   : > { %v622_v46 = vpop.permute.xlu1 %621  ;;  %v5540_v43 = vpop.permute.xlu0 %577 }
  0xb7   : > { %7689 = vst [vmem:[#allocation8_spill] sm:$0xff] %v5540_v43  ;;  %v5550_v51 = vpack.c.bf16 %v1226_v45, %v1222_v42  ;;  %v593_v22 = vsel %vm7597_vm15, %v576_v33, %v5540_v43 }
  0xb8   : > { %583 = vrot.lane.b32.xlu1 %v5346_v6, %s5202_s23  ;;  %937 = vrot.lane.b32.xlu0 %v5353_v7, %s5201_s22  ;;  %v610_v29 = vsel %vm250_vm1, %v593_v22, 0.0  ;;  %v5624_v22 = vsub.f32 %v5471_v61, %v1220_v63 }
  0xb9   : > { %4647 = vmatprep.subr.bf16.mxu1 %v5550_v51  ;;  %4695 = vmatprep.subr.bf16.mxu0 %v5550_v51  ;;  %v998_v34 = vrot.slane %v610_v29, 4 }
  0xba   : > { %v926_v58 = vpop.permute.xlu1 %925  ;;  %v5561_v59 = vpop.permute.xlu0 %623 }
  0xbb   : > { %7690 = vst [vmem:[#allocation9_spill] sm:$0xff] %v5561_v59  ;;  %v944_v1 = vsel %vm943_vm14, %v926_v58, %v928_v24  ;;  %v641_v25 = vsel %vm7562_vm13, %v622_v46, %v5561_v59 }
  0xbc   : > { %v5565_v8 = vsel %vm1137_vm5, %v944_v1, %v970_v55  ;;  %629 = vrot.lane.b32.xlu1 %v5346_v6, %s5203_s24  ;;  %585 = vrot.lane.b32.xlu0 %v5353_v7, %s5202_s23  ;;  %v659_v38 = vsel %vm322_vm6, %v641_v25, 0.0  ;;  %v5619_v1 = vand.u32 4294901760, %v1212_v40 }
  0xbd   : > { %v7568_v14 = vand.u32 4294901760, %v5565_v8  ;;  %v1061_v47 = vrot.slane %v659_v38, 4 }
  0xbe   : > { %v620_v17 = vpop.permute.xlu1 %619  ;;  %v574_v19 = vpop.permute.xlu0 %573  ;;  %v5649_v29 = vsub.f32 %v1212_v40, %v5619_v1 }
  0xbf   : > { %v5577_v21 = vpack.c.bf16 %v7568_v14, %v1224_v10  ;;  %v592_v50 = vsel %vm7597_vm15, %v574_v19, %v576_v33 }
  0xc0   : > { %1021 = vrot.lane.b32.xlu1 %v5316_v3, %s5205_s26  ;;  %631 = vrot.lane.b32.xlu0 %v5353_v7, %s5203_s24  ;;  %v609_v61 = vsel %vm249_vm8, %v592_v50, 0.0  ;;  %7694 = vst [vmem:[#allocation13_spill] sm:$0xff] %v5649_v29 }
  0xc1   : > { %4649 = vmatpush1.bf16.msra.mxu1 %v5577_v21  ;;  %4697 = vmatpush1.bf16.msra.mxu0 %v5577_v21 }
  0xc2   : > { %v5587_v23 = vpop.permute.xlu1 %532  ;;  %v531_v24 = vpop.permute.xlu0 %530 }
  0xc3   : > { %7691 = vst [vmem:[#allocation10_spill] sm:$0xff] %v5587_v23  ;;  %v548_v26 = vsel %vm7563_vm12, %v531_v24, %v5587_v23 }
  0xc4   : > { %721 = vrot.lane.b32.xlu1 %v5316_v3, %s5206_s27  ;;  %1023 = vrot.lane.b32.xlu0 %v5334_v5, %s5205_s26  ;;  %v565_v39 = vsel %vm169_vm4, %v548_v26, 0.0  ;;  %v640_v26 = vsel %vm7562_vm13, %v620_v17, %v622_v46  ;;  %v5644_v46 = vsub.f32 %v5461_v54, %v1216_v62  ;;  %v152_v54 = vadd.s32 256, %v5363_v9 }
  0xc5   : > { %v5613_v53 = vsel %vm1137_vm5, %v565_v39, %v998_v34  ;;  %v1326_v62 = vand.u32 4294901760, %v5624_v22  ;;  %v997_v34 = vrot.slane %v609_v61, 4  ;;  %vm7595_vm13 = vcmask 1039360  }
  0xc6   : > { %v1018_v30 = vpop.permute.xlu1 %1017  ;;  %v529_v31 = vpop.permute.xlu0 %528  ;;  %v7566_v63 = vand.u32 4294901760, %v5613_v53  ;;  %v1314_v40 = vand.u32 4294901760, %v5644_v46  ;;  %v5681_v4 = vand.u32 31, %v152_v54 }
  0xc7   : > { %v547_v33 = vsel %vm7563_vm12, %v529_v31, %v531_v24  ;;  %v658_v31 = vsel %vm321_vm9, %v640_v26, 0.0  ;;  %vm7594_vm12 = vcmask 7168  }
  0xc8   : > { %769 = vrot.lane.b32.xlu1 %v5334_v5, %s5207_s28  ;;  %723 = vrot.lane.b32.xlu0 %v5334_v5, %s5206_s27  ;;  %v564_v38 = vsel %vm168_vm10, %v547_v33, 0.0  ;;  %v5676_v33 = vand.u32 4294901760, %v5649_v29  ;;  %7697 = vst [vmem:[#allocation16_spill] sm:$0xff] %v5681_v4 }
  0xc9   : > { %v5671_v50 = vsel %vm1137_vm5, %v564_v38, %v997_v34  ;;  %v5688_v38 = vsub.f32 %v5530_v41, %v1226_v45 }
  0xca   : > { %v5615_v55 = vpop.permute.xlu1 %717  ;;  %v5617_v58 = vpop.permute.xlu0 %1019  ;;  %7696 = vst [vmem:[#allocation15_spill] sm:$0xff] %v5676_v33  ;;  %v7571_v54 = vand.u32 4294901760, %v5671_v50 }
  0xcb   : > { %7692 = vst [vmem:[#allocation11_spill] sm:$0xff] %v5617_v58  ;;  %v1035_v25 = vsel %vm7596_vm11, %v1018_v30, %v5617_v58 }
  0xcc   : > { %v5631_v19 = vsel %vm1137_vm5, %v1035_v25, %v1061_v47  ;;  %538 = vrot.lane.b32.xlu1 %v5346_v6, %s5204_s25  ;;  %771 = vrot.lane.b32.xlu0 %v5346_v6, %s5207_s28  ;;  %v1060_v47 = vrot.slane %v658_v31, 4  ;;  %v1327_v31 = vsub.f32 %v5624_v22, %v1326_v62 }
  0xcd   : > { %v7567_v28 = vand.u32 4294901760, %v5631_v19 }
  0xce   : > { %v766_v17 = vpop.permute.xlu1 %765  ;;  %v5646_v24 = vpop.permute.xlu0 %719 }
  0xcf   : > { %7693 = vst [vmem:[#allocation12_spill] sm:$0xff] %v5646_v24  ;;  %v5659_v39 = vpack.c.bf16 %v7567_v28, %v7566_v63  ;;  %v153_v63 = vadd.s32 384, %v5363_v9  ;;  %v737_v41 = vsel %vm7594_vm12, %v5615_v55, %v5646_v24 }
  0xd0   : > { %673 = vrot.lane.b32.xlu1 %v5316_v3, %s5208_s29  ;;  %540 = vrot.lane.b32.xlu0 %v5353_v7, %s5204_s25  ;;  %v5721_v3 = vcombine.high %v5353_v7, %v5353_v7  ;;  %v755_v24 = vsel %vm250_vm1, %v737_v41, 0.0  ;;  %vm251_vm1 = vcmp.ge.s32.totalorder %v5681_v4, 1  ;;  %v1328_v41 = vand.u32 4294901760, %v1327_v31 }
  0xd1   : > { %4651 = vmatprep.subr.bf16.mxu1 %v5659_v39  ;;  %4699 = vmatprep.subr.bf16.mxu0 %v5659_v39 }
  0xd2   : > { %v1016_v25 = vpop.permute.xlu1 %1015  ;;  %v5673_v26 = vpop.permute.xlu0 %767  ;;  %7698 = vst [vmem:[#allocation17_spill] sm:$0xff] %v5721_v3 }
  0xd3   : > { %7695 = vst [vmem:[#allocation14_spill] sm:$0xff] %v5673_v26  ;;  %v1034_v61 = vsel %vm7596_vm11, %v1016_v25, %v1018_v30  ;;  %v783_v52 = vsel %vm7595_vm13, %v766_v17, %v5673_v26  ;;  %v5700_v30 = vsub.f32 %v5520_v32, %v1222_v42  ;;  %v1315_v32 = vsub.f32 %v5644_v46, %v1314_v40 }
  0xd4   : > { %v1183_v34 = vsel %vm1137_vm5, %v1034_v61, %v1060_v47  ;;  %v800_v28 = vsel %vm322_vm6, %v783_v52, 0.0  ;;  %1025 = vrot.lane.b32.xlu1 %v5346_v6, %s5205_s26  ;;  %675 = vrot.lane.b32.xlu0 %v5334_v5, %s5208_s29  ;;  %v5709_v52 = vsub.f32 %v5559_v57, %v1224_v10  ;;  %vm7585_vm6 = vcmask 15360  }
  0xd5   : > { %v1236_v45 = vand.u32 4294901760, %v1183_v34  ;;  %v1298_v5 = vsub.f32 %v5649_v29, %v5676_v33  ;;  %v1120_v42 = vrot.slane %v800_v28, 4  ;;  %v7699_v57 = vand.u32 4294901760, %v5565_v8 }
  0xd6   : > { %v764_v47 = vpop.permute.xlu1 %763  ;;  %v716_v25 = vpop.permute.xlu0 %715  ;;  %v1316_v58 = vand.u32 4294901760, %v1315_v32  ;;  %v155_v29 = vadd.s32 640, %v5363_v9 }
  0xd7   : > { %v782_v61 = vsel %vm7595_vm13, %v764_v47, %v766_v17  ;;  %v5717_v14 = vpack.c.bf16 %v1236_v45, %v7571_v54  ;;  %v5726_v10 = vsub.f32 %v5565_v8, %v7699_v57  ;;  %v736_v47 = vsel %vm7594_vm12, %v716_v25, %v5615_v55 }
  0xd8   : > { %v799_v28 = vsel %vm321_vm9, %v782_v61, 0.0  ;;  %725 = vrot.lane.b32.xlu1 %v5346_v6, %s5206_s27  ;;  %1027 = vrot.lane.b32.xlu0 %v5353_v7, %s5205_s26  ;;  %v5742_v8 = vand.u32 31, %v153_v63  ;;  %v1332_v61 = vand.u32 4294901760, %v5700_v30  ;;  %v5748_v17 = vand.u32 4294901760, %v1298_v5 }
  0xd9   : > { %4653 = vmatpush1.bf16.msra.mxu1 %v5717_v14  ;;  %4701 = vmatpush1.bf16.msra.mxu0 %v5717_v14  ;;  %v5750_v55 = vpack.c.bf16 %v1326_v62, %v1314_v40  ;;  %v1088_v25 = vrot.slane %v755_v24, 4  ;;  %v1119_v59 = vrot.slane %v799_v28, 4  ;;  %v1202_v63 = vsel %vm1137_vm5, %v5244_v0, %v1120_v42 }
  0xda   : > { %v5746_v54 = vpop.permute.xlu1 %671  ;;  %v670_v26 = vpop.permute.xlu0 %669  ;;  %7701 = vst [vmem:[#allocation19_spill] sm:$0xff] %v5748_v17  ;;  %v754_v57 = vsel %vm249_vm8, %v736_v47, 0.0  ;;  %v7702_v24 = vand.u32 4294901760, %v5688_v38  ;;  %v7703_v0 = vand.u32 4294901760, %v5631_v19  ;;  %vm252_vm8 = vcmp.ge.s32.totalorder %v5742_v8, 1 }
  0xdb   : > { %7700 = vst [vmem:[#allocation18_spill] sm:$0xff] %v5746_v54  ;;  %v689_v23 = vsel %vm7585_vm6, %v670_v26, %v5746_v54  ;;  %v5776_v13 = vpack.c.bf16 %v1328_v41, %v1316_v58  ;;  %v7704_v42 = vand.u32 4294901760, %v5613_v53  ;;  %v1087_v58 = vrot.slane %v754_v57, 4 }
  0xdc   : > { %v707_v5 = vsel %vm169_vm4, %v689_v23, 0.0  ;;  %773 = vrot.lane.b32.xlu1 %v5353_v7, %s5207_s28  ;;  %727 = vrot.lane.b32.xlu0 %v5353_v7, %s5206_s27  ;;  %v1345_v62 = vsub.f32 %v5688_v38, %v7702_v24  ;;  %v5771_v40 = vsub.f32 %v5631_v19, %v7703_v0  ;;  %vm170_vm4 = vcmp.ge.s32.totalorder %v5681_v4, 2 }
  0xdd   : > { %v1193_v32 = vsel %vm1137_vm5, %v707_v5, %v1088_v25  ;;  %v1333_v23 = vsub.f32 %v5700_v30, %v1332_v61  ;;  %v5782_v28 = vsub.f32 %v5613_v53, %v7704_v42  ;;  %v1242_v19 = vand.u32 4294901760, %v1202_v63 }
  0xde   : > { %v1238_v47 = vand.u32 4294901760, %v1193_v32  ;;  %v283_v24 = vpop.permute.xlu1 %282  ;;  %v668_v31 = vpop.permute.xlu0 %667  ;;  %v7705_v0 = vand.u32 4294901760, %v5709_v52  ;;  %v5789_v5 = vsub.f32 %v1183_v34, %v1236_v45  ;;  %v1201_v54 = vsel %vm1137_vm5, %v5252_v2, %v1119_v59 }
  0xdf   : > { %v688_v41 = vsel %vm7585_vm6, %v668_v31, %v670_v26  ;;  %v7706_v53 = vand.u32 4294901760, %v5726_v10  ;;  %v1346_v45 = vand.u32 4294901760, %v1345_v62  ;;  %v297_v2 = vsel %vm7598_vm0, %v5372_v12, %v283_v24 }
  0xe0   : > { %v5787_v25 = vsub.f32 %v5709_v52, %v7705_v0  ;;  %v706_v43 = vsel %vm168_vm10, %v688_v41, 0.0  ;;  %677 = vrot.lane.b32.xlu1 %v5346_v6, %s5208_s29  ;;  %775 = vrot.lane.b32.xlu0 %v5721_v3, %s5207_s28  ;;  %v5803_v34 = vpack.c.bf16 %v1242_v19, %v1238_v47  ;;  %v5805_v26 = vsub.f32 %v1193_v32, %v1238_v47 }
  0xe1   : > { %v1351_v42 = vsub.f32 %v5726_v10, %v7706_v53  ;;  %v1192_v59 = vsel %vm1137_vm5, %v706_v43, %v1087_v58  ;;  %vm171_vm9 = vcmp.ge.s32.totalorder %v5742_v8, 2  ;;  %v7579_v27 = vand.u32 4294901760, %v5771_v40 }
  0xe2   : > { %v7707_v57 = vand.u32 4294901760, %v5671_v50  ;;  %v1240_v0 = vand.u32 4294901760, %v1192_v59  ;;  %v5817_v41 = vpop.permute.xlu1 %354  ;;  %4655 = vmatprep.subr.bf16.mxu1 %v5803_v34  ;;  %4703 = vmatprep.subr.bf16.mxu0 %v5803_v34  ;;  %v5821_v12 = vpop.permute.xlu0 %284  ;;  %v1244_v43 = vand.u32 4294901760, %v1201_v54  ;;  %v5825_v47 = vsub.f32 %v1202_v63, %v1242_v19 }
  0xe3   : > { %v1334_v58 = vand.u32 4294901760, %v1333_v23  ;;  %v314_v53 = vsel %vm251_vm1, %v297_v2, 0.0  ;;  %vm323_vm10 = vcmp.le.s32.totalorder %v5681_v4, 30  ;;  %v7708_v63 = vand.u32 4294901760, %v5688_v38 }
  0xe4   : > { %v5815_v31 = vsub.f32 %v5671_v50, %v7707_v57  ;;  %v1340_v50 = vand.u32 4294901760, %v5787_v25  ;;  %v5830_v57 = vsub.f32 %v1192_v59, %v1240_v0  ;;  %290 = vrot.lane.b32.xlu1 %v5721_v3, %s5195_s16  ;;  %679 = vrot.lane.b32.xlu0 %v5353_v7, %s5208_s29  ;;  %v5837_v62 = vpack.c.bf16 %v1244_v43, %v1240_v0  ;;  %v5844_v25 = vld [vmem:[%s5241_s14 + $0x20] sm:$0xff] }
  0xe5   : > { %v4710_v23 = vpack.c.bf16 %v7708_v63, %v1332_v61  ;;  %v298_v19 = vsel %vm7598_vm0, %v283_v24, %v5821_v12  ;;  %v1352_v2 = vand.u32 4294901760, %v1351_v42  ;;  %v1369_v59 = vsub.f32 %v5771_v40, %v7579_v27 }
  0xe6   : > { %v211_v7 = vpop.permute.xlu1 %210  ;;  %4657 = vmatpush1.bf16.msra.mxu1 %v5837_v62  ;;  %v5852_v0 = vsub.f32 %v1201_v54, %v1244_v43  ;;  %4705 = vmatpush1.bf16.msra.mxu0 %v5837_v62  ;;  %v5855_v61 = vpop.permute.xlu0 %356  ;;  %v4662_v24 = vpack.c.bf16 %v1346_v45, %v1334_v58  ;;  %v7709_v42 = vand.u32 4294901760, %v5782_v28  ;;  %v7710_v27 = vand.u32 4294901760, %v5789_v5 }
  0xe7   : > { %v819_v6 = vrot.slane %v314_v53, 4  ;;  %v225_v37 = vsel %vm7600_vm2, %v5394_v20, %v211_v7  ;;  %4659 = vmatprep.subr.bf16.mxu1 %v5489_v16  ;;  %4707 = vmatprep.subr.bf16.mxu0 %v5468_v60  ;;  %v1392_v54 = vand.u32 4294901760, %v5825_v47  ;;  %v315_v43 = vsel %vm252_vm8, %v298_v19, 0.0 }
  0xe8   : > { %v1357_v63 = vsub.f32 %v5782_v28, %v7709_v42  ;;  %v5863_v32 = vsub.f32 %v5789_v5, %v7710_v27  ;;  %v242_v58 = vsel %vm170_vm4, %v225_v37, 0.0  ;;  %362 = vrot.lane.b32.xlu1 %v5721_v3, %s5194_s15  ;;  %292 = vrot.lane.b32.xlu0 %v5844_v25, %s5195_s16  ;;  %v7711_v20 = vand.u32 4294901760, %v5709_v52 }
  0xe9   : > { %v7712_v60 = vand.u32 4294901760, %v5726_v10  ;;  %v5884_v27 = vsel %vm1137_vm5, %v242_v58, %v819_v6  ;;  %1300 = vmatmul.mubr.f32.vlgmr.msra.gmra.mrb[0].mxu1 %v5748_v17  ;;  %1647 = vmatmul.mubr.f32.vlgmr.msra.gmra.mrb[0].mxu0 %v5676_v33  ;;  %v4664_v53 = vpack.c.bf16 %v1352_v2, %v1340_v50  ;;  %v1370_v37 = vand.u32 4294901760, %v1369_v59 }
  0xea   : > { %v7713_v19 = vand.u32 4294901760, %v5805_v26  ;;  %v7582_v45 = vand.u32 4294901760, %v5884_v27  ;;  %v5892_v18 = vpop.permute.xlu1 %286  ;;  %4661 = vmatpush1.bf16.msra.mxu1 %v5776_v13  ;;  %4709 = vmatpush1.bf16.msra.mxu0 %v5750_v55  ;;  %v5896_v6 = vpop.permute.xlu0 %212  ;;  %v1358_v58 = vand.u32 4294901760, %v1357_v63  ;;  %v1398_v2 = vand.u32 4294901760, %v5852_v0 }
  0xeb   : > { %v4712_v16 = vpack.c.bf16 %v7712_v60, %v7711_v20  ;;  %v7714_v20 = vand.u32 4294901760, %v5815_v31  ;;  %v820_v59 = vrot.slane %v315_v43, 4  ;;  %v226_v60 = vsel %vm7600_vm2, %v211_v7, %v5896_v6  ;;  %4663 = vmatprep.subr.bf16.mxu1 %v4662_v24  ;;  %4711 = vmatprep.subr.bf16.mxu0 %v4710_v23 }
  0xec   : > { %v1381_v42 = vsub.f32 %v5805_v26, %v7713_v19  ;;  %v1376_v19 = vand.u32 4294901760, %v5863_v32  ;;  %v1393_v13 = vsub.f32 %v5825_v47, %v1392_v54  ;;  %v369_v55 = vsel %vm7601_vm3, %v5370_v11, %v5817_v41  ;;  %218 = vrot.lane.b32.xlu1 %v5721_v3, %s5196_s17  ;;  %364 = vrot.lane.b32.xlu0 %v5844_v25, %s5194_s15 }
  0xed   : > { %v1363_v50 = vsub.f32 %v5815_v31, %v7714_v20  ;;  %v5912_v63 = vsub.f32 %v5884_v27, %v7582_v45  ;;  %v243_v43 = vsel %vm171_vm9, %v226_v60, 0.0  ;;  %v7715_v32 = vand.u32 4294901760, %v5830_v57 }
  0xee   : > { %v5924_v11 = vsel %vm1137_vm5, %v243_v43, %v820_v59  ;;  %v4666_v7 = vpack.c.bf16 %v1370_v37, %v1358_v58  ;;  %v7716_v24 = vand.u32 4294901760, %v5782_v28  ;;  %v7717_v20 = vand.u32 4294901760, %v5771_v40  ;;  %v5934_v56 = vpop.permute.xlu1 %358  ;;  %4665 = vmatpush1.bf16.msra.mxu1 %v4664_v53  ;;  %4713 = vmatpush1.bf16.msra.mxu0 %v4712_v16  ;;  %v5936_v59 = vpop.permute.xlu0 %288 }
  0xef   : > { %v1387_v23 = vsub.f32 %v5830_v57, %v7715_v32  ;;  %v1382_v60 = vand.u32 4294901760, %v1381_v42  ;;  %v7718_v33 = vmov 0.0   ;;  %vm324_vm6 = vcmp.le.s32.totalorder %v5742_v8, 30  ;;  %7719 = vst [vmem:[#allocation20_spill] sm:$0xff] %v5936_v59 }
  0xf0   : > { %v4714_v45 = vpack.c.bf16 %v7717_v20, %v7716_v24  ;;  %1450 = vmatprep.mubr.f32.mxu1 %v7718_v33  ;;  %1765 = vmatprep.mubr.f32.mxu0 %v7718_v33  ;;  %v1364_v37 = vand.u32 4294901760, %v1363_v50  ;;  %v1399_v58 = vsub.f32 %v5852_v0, %v1398_v2  ;;  %v386_v42 = vsel %vm323_vm10, %v369_v55, 0.0 }
  0xf1   : > { %v154_v43 = vadd.s32 512, %v5363_v9  ;;  %4667 = vmatprep.subr.bf16.mxu1 %v4666_v7  ;;  %v7720_v32 = vand.u32 4294901760, %v5815_v31  ;;  %v7721_v24 = vand.u32 4294901760, %v5789_v5  ;;  %v1394_v17 = vand.u32 4294901760, %v1393_v13  ;;  %849 = vrot.lane.b32.xlu1 %v5721_v3, %s5197_s18 }
  0xf2   : > { %4715 = vmatprep.subr.bf16.mxu0 %v4714_v45  ;;  %v370_v16 = vsel %vm7601_vm3, %v5817_v41, %v5855_v61  ;;  %v7722_v53 = vand.u32 4294901760, %v5924_v11  ;;  %220 = vrot.lane.b32.xlu0 %v5844_v25, %s5196_s17  ;;  %v4668_v45 = vpack.c.bf16 %v1376_v19, %v1364_v37  ;;  %v1388_v55 = vand.u32 4294901760, %v1387_v23  ;;  %v842_v4 = vpop.permute.xlu1 %841  ;;  %v5960_v41 = vpop.permute.xlu0 %360 }
  0xf3   : > { %v4716_v20 = vpack.c.bf16 %v7721_v24, %v7720_v32  ;;  %v4670_v7 = vpack.c.bf16 %v1394_v17, %v1382_v60  ;;  %v7723_v13 = vand.u32 4294901760, %v5805_v26  ;;  %v882_v24 = vrot.slane %v386_v42, 4  ;;  %7724 = vst [vmem:[#allocation21_spill] sm:$0xff] %v5960_v41 }
  0xf4   : > { %v5952_v50 = vsub.f32 %v5924_v11, %v7722_v53  ;;  %4669 = vmatpush1.bf16.msra.mxu1 %v4668_v45  ;;  %v1400_v53 = vand.u32 4294901760, %v1399_v58  ;;  %v387_v44 = vsel %vm324_vm6, %v370_v16, 0.0  ;;  %v856_v19 = vsel %vm7603_vm7, %v5421_v35, %v842_v4 }
  0xf5   : > { %v4718_v32 = vpack.c.bf16 %v1392_v54, %v7723_v13  ;;  %4717 = vmatpush1.bf16.msra.mxu0 %v4716_v20  ;;  %4671 = vmatprep.subr.bf16.mxu1 %v4670_v7  ;;  %v5967_v17 = vand.u32 31, %v154_v43  ;;  %v5970_v54 = vsel %vm1137_vm5, %v856_v19, %v882_v24  ;;  %v7725_v60 = vand.u32 4294901760, %v5830_v57 }
  0xf6   : > { %452 = vrot.lane.b32.xlu1 %v5721_v3, %s5198_s19  ;;  %851 = vrot.lane.b32.xlu0 %v5844_v25, %s5197_s18  ;;  %v4672_v23 = vpack.c.bf16 %v1400_v53, %v1388_v55  ;;  %v1867_v58 = vand.u32 4294901760, %v5970_v54  ;;  %v1961_v35 = vand.u32 4294901760, %v5912_v63  ;;  %v883_v42 = vrot.slane %v387_v44, 4  ;;  %v5980_v43 = vpop.permute.xlu1 %444  ;;  %v5982_v20 = vpop.permute.xlu0 %843 }
  0xf7   : > { %4719 = vmatprep.subr.bf16.mxu0 %v4718_v32  ;;  %v4720_v37 = vpack.c.bf16 %v1398_v2, %v7725_v60  ;;  %v5984_v16 = vand.u32 31, %v155_v29  ;;  %v857_v2 = vsel %vm7603_vm7, %v842_v4, %v5982_v20  ;;  %v7726_v55 = vpack.c.bf16 %v5449_v49, %v5423_v36 }
  0xf8   : > { %4673 = vmatpush1.bf16.msra.mxu1 %v4672_v23  ;;  %v5989_v45 = vsub.f32 %v5970_v54, %v1867_v58  ;;  %vm253_vm12 = vcmp.ge.s32.totalorder %v5967_v17, 1  ;;  %v299_v44 = vsel %vm7598_vm0, %v5821_v12, %v5892_v18  ;;  %v6001_v29 = vsel %vm1137_vm5, %v857_v2, %v883_v42 }
  0xf9   : > { %4721 = vmatpush1.bf16.msra.mxu0 %v4720_v37  ;;  %4675 = vmatprep.subr.bf16.mxu1 %v7726_v55  ;;  %v4676_v4 = vpack.c.bf16 %v5624_v22, %v5644_v46  ;;  %v1865_v49 = vand.u32 4294901760, %v6001_v29  ;;  %v1955_v12 = vand.u32 4294901760, %v5952_v50  ;;  %vm325_vm13 = vcmp.le.s32.totalorder %v5967_v17, 30 }
  0xfa   : > { %4723 = vmatprep.subr.bf16.mxu0 %v5447_v48  ;;  %497 = vrot.lane.b32.xlu1 %v5721_v3, %s5199_s20  ;;  %v1973_v36 = vand.u32 4294901760, %v5989_v45  ;;  %v6017_v7 = vpop.permute.xlu1 %489  ;;  %v6020_v22 = vpop.permute.xlu0 %446  ;;  %v4678_v46 = vpack.c.bf16 %v5688_v38, %v5700_v30  ;;  %v1962_v13 = vsub.f32 %v5912_v63, %v1961_v35  ;;  %vm254_vm11 = vcmp.ge.s32.totalorder %v5984_v16, 1 }
  0xfb   : > { %454 = vrot.lane.b32.xlu0 %v5844_v25, %s5198_s19  ;;  %1452 = vmatmul.mubr.f32.vlgmr.msra.gmra.mrb[0].mxu1 %v5619_v1  ;;  %v6030_v24 = vsub.f32 %v6001_v29, %v1865_v49  ;;  %vm7599_vm15 = vcmp.ge.s32.totalorder %v5967_v17, 2  ;;  %v316_v53 = vsel %vm253_vm12, %v299_v44, 0.0  ;;  %v4680_v38 = vpack.c.bf16 %v5726_v10, %v5709_v52 }
  0xfc   : > { %4677 = vmatpush1.bf16.msra.mxu1 %v4676_v4  ;;  %1767 = vmatmul.mubr.f32.vlgmr.msra.gmra.mrb[0].mxu0 %v5619_v1  ;;  %v1974_v32 = vsub.f32 %v5989_v45, %v1973_v36  ;;  %v4682_v30 = vpack.c.bf16 %v5771_v40, %v5782_v28  ;;  %v6041_v19 = vpack.c.bf16 %v1973_v36, %v1961_v35  ;;  %v821_v37 = vrot.slane %v316_v53, 4 }
  0xfd   : > { %4725 = vmatpush1.bf16.msra.mxu0 %v5483_v15  ;;  %4679 = vmatprep.subr.bf16.mxu1 %v4678_v46  ;;  %v300_v15 = vsel %vm7598_vm0, %v5892_v18, %v5936_v59  ;;  %v1967_v23 = vand.u32 4294901760, %v6030_v24  ;;  %v4684_v28 = vpack.c.bf16 %v5789_v5, %v5815_v31  ;;  %vm7602_vm0 = vcmp.ge.s32.totalorder %v5984_v16, 2 }
  0xfe   : > { %4727 = vmatprep.subr.bf16.mxu0 %v5550_v51  ;;  %7727 = vst [vmem:[#allocation22_spill] sm:$0xff] %v6041_v19  ;;  %407 = vrot.lane.b32.xlu1 %v5721_v3, %s5200_s21  ;;  %v1956_v51 = vsub.f32 %v5952_v50, %v1955_v12  ;;  %v1975_v52 = vand.u32 4294901760, %v1974_v32  ;;  %v215_v10 = vpop.permute.xlu1 %214  ;;  %v6052_v40 = vpop.permute.xlu0 %491  ;;  %v1963_v18 = vand.u32 4294901760, %v1962_v13  ;;  %v371_v35 = vsel %vm7601_vm3, %v5855_v61, %v5934_v56 }
  0xff   : > { %499 = vrot.lane.b32.xlu0 %v5844_v25, %s5199_s20  ;;  %1554 = vmatprep.mubr.f32.mxu1 %v7718_v33  ;;  %v227_v42 = vsel %vm7600_vm2, %v5896_v6, %v215_v10  ;;  %v1968_v5 = vsub.f32 %v6030_v24, %v1967_v23  ;;  %v317_v31 = vsel %vm254_vm11, %v300_v15, 0.0  ;;  %v6075_v61 = vpack.c.bf16 %v1967_v23, %v1955_v12 }
 0x100   : > { %4681 = vmatpush1.bf16.msra.mxu1 %v4680_v38  ;;  %v244_v2 = vsel %vm7599_vm15, %v227_v42, 0.0  ;;  %1853 = vmatprep.mubr.f32.mxu0 %v7718_v33  ;;  %v6073_v55 = vpack.c.bf16 %v1975_v52, %v1963_v18  ;;  %v1957_v44 = vand.u32 4294901760, %v1956_v51  ;;  %vm326_vm15 = vcmp.le.s32.totalorder %v5984_v16, 30 }
 0x101   : > { %4729 = vmatpush1.bf16.msra.mxu0 %v5577_v21  ;;  %4683 = vmatprep.subr.bf16.mxu1 %v4682_v30  ;;  %7728 = vst [vmem:[#allocation23_spill] sm:$0xff] %v6075_v61  ;;  %v6078_v6 = vsel %vm1137_vm5, %v244_v2, %v821_v37  ;;  %v4686_v21 = vpack.c.bf16 %v5825_v47, %v5805_v26  ;;  %v388_v46 = vsel %vm325_vm13, %v371_v35, 0.0  ;;  %v822_v13 = vrot.slane %v317_v31, 4  ;;  %v7734_v37 = vld [vmem:[#allocation13_spill] sm:$0xff] }
 0x102   : > { %4731 = vmatprep.subr.bf16.mxu0 %v5659_v39  ;;  %939 = vrot.lane.b32.xlu1 %v5721_v3, %s5201_s22  ;;  %v1969_v39 = vand.u32 4294901760, %v1968_v5  ;;  %v2510_v4 = vand.u32 4294901760, %v6078_v6  ;;  %v6088_v36 = vpop.permute.xlu1 %399  ;;  %v6090_v12 = vpop.permute.xlu0 %216  ;;  %v372_v32 = vsel %vm7601_vm3, %v5934_v56, %v5960_v41  ;;  %v7731_v56 = vand.u32 4294901760, %v5924_v11  ;;  %v7739_v5 = vld [vmem:[#allocation5_spill] sm:$0xff] }
 0x103   : > { %409 = vrot.lane.b32.xlu0 %v5844_v25, %s5200_s21  ;;  %7729 = vst [vmem:[#allocation24_spill] sm:$0xff] %v6090_v12  ;;  %v228_v26 = vsel %vm7600_vm2, %v215_v10, %v6090_v12  ;;  %v884_v51 = vrot.slane %v388_v46, 4  ;;  %vm7738_vm2 = vcmask 531456   ;;  %vm7740_vm3 = vcmask 515072  }
 0x104   : > { %4685 = vmatpush1.bf16.msra.mxu1 %v4684_v28  ;;  %v6097_v47 = vpack.c.bf16 %v1969_v39, %v1957_v44  ;;  %v6105_v53 = vsub.f32 %v6078_v6, %v2510_v4  ;;  %v245_v38 = vsel %vm7602_vm0, %v228_v26, 0.0  ;;  %v6121_v15 = vpack.c.bf16 %v1865_v49, %v7731_v56  ;;  %vm7741_vm0 = vmmov %vm7738_vm2 }
 0x105   : > { %4733 = vmatpush1.bf16.msra.mxu0 %v5717_v14  ;;  %4687 = vmatprep.subr.bf16.mxu1 %v4686_v21  ;;  %v4688_v14 = vpack.c.bf16 %v5852_v0, %v5830_v57  ;;  %v1143_v30 = vsel %vm1137_vm5, %v245_v38, %v822_v13  ;;  %v389_v57 = vsel %vm326_vm15, %v372_v32, 0.0  ;;  %v7732_v49 = vand.u32 4294901760, %v5884_v27 }
 0x106   : > { %7730 = vst [vmem:[#allocation25_spill] sm:$0xff] %v6105_v53  ;;  %4735 = vmatprep.subr.bf16.mxu0 %v5803_v34  ;;  %587 = vrot.lane.b32.xlu1 %v5721_v3, %s5202_s23  ;;  %v2508_v23 = vand.u32 4294901760, %v1143_v30  ;;  %v846_v34 = vpop.permute.xlu1 %845  ;;  %v6123_v52 = vpop.permute.xlu0 %401  ;;  %v504_v31 = vsel %vm7740_vm3, %v7739_v5, %v6017_v7  ;;  %v460_v21 = vsel %vm7741_vm0, %v5980_v43, %v6020_v22  ;;  %vm7745_vm0 = vmmov %vm7740_vm3 }
 0x107   : > { %941 = vrot.lane.b32.xlu0 %v5844_v25, %s5201_s22  ;;  %v858_v0 = vsel %vm7603_vm7, %v5982_v20, %v846_v34  ;;  %v6138_v10 = vpack.c.bf16 %v1867_v58, %v7732_v49  ;;  %v2608_v20 = vand.u32 4294901760, %v6105_v53  ;;  %v7737_v58 = vld [vmem:[#allocation4_spill] sm:$0xff]  ;;  %v6180_v32 = vcombine.high %v5844_v25, %v5844_v25 }
 0x108   : > { %4689 = vmatpush1.bf16.msra.mxu1 %v4688_v14  ;;  %v6131_v11 = vsub.f32 %v1143_v30, %v2508_v23  ;;  %v1151_v29 = vsel %vm1137_vm5, %v858_v0, %v884_v51  ;;  %v459_v42 = vsel %vm7738_vm2, %v7737_v58, %v5980_v43  ;;  %v521_v56 = vsel %vm323_vm10, %v504_v31, 0.0 }
 0x109   : > { %4737 = vmatpush1.bf16.msra.mxu0 %v5837_v62  ;;  %4739 = vmatprep.subr.bf16.mxu1 %v6121_v15  ;;  %7733 = vst [vmem:[#allocation26_spill] sm:$0xff] %v6138_v10  ;;  %v2514_v28 = vand.u32 4294901760, %v1151_v29  ;;  %v885_v62 = vrot.slane %v389_v57, 4  ;;  %7743 = vst [vmem:[#allocation5_spill] sm:$0xff] %v6180_v32  ;;  %v2609_v43 = vsub.f32 %v6105_v53, %v2608_v20  ;;  %v476_v30 = vsel %vm251_vm1, %v459_v42, 0.0 }
 0x10a   : > { %633 = vrot.lane.b32.xlu1 %v5721_v3, %s5203_s24  ;;  %v6145_v18 = vpop.permute.xlu1 %448  ;;  %v6148_v35 = vpop.permute.xlu0 %847  ;;  %v2602_v46 = vand.u32 4294901760, %v6131_v11  ;;  %v477_v57 = vsel %vm252_vm8, %v460_v21, 0.0  ;;  %v505_v0 = vsel %vm7745_vm0, %v6017_v7, %v6052_v40  ;;  %vm7747_vm2 = vcmask 539648  }
 0x10b   : > { %589 = vrot.lane.b32.xlu0 %v5844_v25, %s5202_s23  ;;  %1557 = vmatmul.mubr.f32.vlgmr.msra.gmra.mrb[0].mxu1 %v7734_v37  ;;  %7735 = vst [vmem:[#allocation27_spill] sm:$0xff] %v6148_v35  ;;  %v6151_v27 = vsub.f32 %v1151_v29, %v2514_v28  ;;  %v859_v54 = vsel %vm7603_vm7, %v846_v34, %v6148_v35  ;;  %v7746_v29 = vld [vmem:[#allocation6_spill] sm:$0xff]  ;;  %vm7750_vm3 = vmmov %vm7747_vm2  ;;  %v522_v31 = vsel %vm324_vm6, %v505_v0, 0.0  ;;  %v972_v38 = vrot.slane %v521_v56, 4 }
 0x10c   : > { %1855 = vmatmul.mubr.f32.vlgmr.msra.gmra.mrb[0].mxu0 %v5619_v1  ;;  %4741 = vmatpush1.bf16.msra.mxu1 %v6138_v10  ;;  %v1152_v2 = vsel %vm1137_vm5, %v859_v54, %v885_v62  ;;  %v414_v49 = vsel %vm7747_vm2, %v7746_v29, %v6088_v36  ;;  %v6204_v54 = vpack.c.bf16 %v2514_v28, %v2510_v4  ;;  %v2610_v4 = vand.u32 4294901760, %v2609_v43  ;;  %vm7760_vm7 = vmmov %vm7745_vm0 }
 0x10d   : > { %7736 = vst [vmem:[#allocation28_spill] sm:$0xff] %v6151_v27  ;;  %1941 = vmatprep.mubr.f32.mxu1 %v7718_v33  ;;  %2588 = vmatprep.mubr.f32.mxu0 %v7718_v33  ;;  %v2620_v44 = vand.u32 4294901760, %v6151_v27  ;;  %v2512_v39 = vand.u32 4294901760, %v1152_v2  ;;  %v415_v58 = vsel %vm7750_vm3, %v6088_v36, %v6123_v52  ;;  %v2603_v7 = vsub.f32 %v6131_v11, %v2602_v46 }
 0x10e   : > { %542 = vrot.lane.b32.xlu1 %v5721_v3, %s5204_s25  ;;  %v6174_v13 = vpop.permute.xlu1 %493  ;;  %v6176_v26 = vpop.permute.xlu0 %450  ;;  %7749 = vst [vmem:[#allocation6_spill] sm:$0xff] %v6204_v54  ;;  %v432_v43 = vsel %vm171_vm9, %v415_v58, 0.0  ;;  %vm7758_vm2 = vcmask 531456  }
 0x10f   : > { %635 = vrot.lane.b32.xlu0 %v5844_v25, %s5203_s24  ;;  %7742 = vst [vmem:[#allocation4_spill] sm:$0xff] %v6176_v26  ;;  %v2621_v51 = vsub.f32 %v6151_v27, %v2620_v44  ;;  %v6190_v34 = vsub.f32 %v1152_v2, %v2512_v39  ;;  %v6200_v62 = vpack.c.bf16 %v2512_v39, %v2508_v23  ;;  %v7753_v2 = vld [vmem:[#allocation7_spill] sm:$0xff]  ;;  %vm7759_vm3 = vmmov %vm7758_vm2  ;;  %v7787_v27 = vld [vmem:[#allocation14_spill] sm:$0xff] }
 0x110   : > { %v6220_v5 = vpack.c.bf16 %v2620_v44, %v2608_v20  ;;  %v910_v20 = vrot.slane %v477_v57, 4  ;;  %v431_v44 = vsel %vm170_vm4, %v414_v49, 0.0 }
 0x111   : > { %7748 = vst [vmem:[#allocation16_spill] sm:$0xff] %v6200_v62  ;;  %v2614_v42 = vand.u32 4294901760, %v6190_v34  ;;  %4835 = vmatprep.subr.bf16.mxu0 %v6200_v62  ;;  %v2622_v28 = vand.u32 4294901760, %v2621_v51 }
 0x112   : > { %1029 = vrot.lane.b32.xlu1 %v5721_v3, %s5205_s26  ;;  %v932_v23 = vpop.permute.xlu1 %931  ;;  %v6216_v6 = vpop.permute.xlu0 %495  ;;  %7752 = vst [vmem:[#allocation30_spill] sm:$0xff] %v6220_v5  ;;  %4837 = vmatpush1.bf16.msra.mxu0 %v6204_v54  ;;  %v6244_v57 = vsel %vm1137_vm5, %v432_v43, %v910_v20 }
 0x113   : > { %544 = vrot.lane.b32.xlu0 %v5844_v25, %s5204_s25  ;;  %7751 = vst [vmem:[#allocation29_spill] sm:$0xff] %v6216_v6  ;;  %v946_v21 = vsel %vm943_vm14, %v7753_v2, %v932_v23  ;;  %v2615_v39 = vsub.f32 %v6190_v34, %v2614_v42  ;;  %v6228_v29 = vpack.c.bf16 %v2614_v42, %v2602_v46  ;;  %v909_v2 = vrot.slane %v476_v30, 4 }
 0x114   : > { %v6232_v51 = vpack.c.bf16 %v2622_v28, %v2610_v4  ;;  %v973_v46 = vrot.slane %v522_v31, 4  ;;  %v1167_v56 = vsel %vm1137_vm5, %v946_v21, %v972_v38  ;;  %v2604_v4 = vand.u32 4294901760, %v2603_v7 }
 0x115   : > { %7754 = vst [vmem:[#allocation7_spill] sm:$0xff] %v6228_v29  ;;  %v2616_v0 = vand.u32 4294901760, %v2615_v39  ;;  %v6248_v28 = vsel %vm1137_vm5, %v431_v44, %v909_v2  ;;  %v1875_v30 = vand.u32 4294901760, %v1167_v56  ;;  %v1869_v38 = vand.u32 4294901760, %v6244_v57 }
 0x116   : > { %637 = vrot.lane.b32.xlu1 %v6180_v32, %s5203_s24  ;;  %v6241_v42 = vpop.permute.xlu1 %579  ;;  %v934_v58 = vpop.permute.xlu0 %933  ;;  %v507_v60 = vsel %vm7760_vm7, %v6174_v13, %v6216_v6  ;;  %vm7763_vm7 = vcmp.ge.s32.totalorder %v5984_v16, 2 }
 0x117   : > { %1031 = vrot.lane.b32.xlu0 %v5844_v25, %s5205_s26  ;;  %v947_v49 = vsel %vm943_vm14, %v932_v23, %v934_v58  ;;  %v6251_v48 = vpack.c.bf16 %v2616_v0, %v2604_v4  ;;  %v1871_v23 = vand.u32 4294901760, %v6248_v28  ;;  %v506_v0 = vsel %vm7745_vm0, %v6052_v40, %v6174_v13 }
 0x118   : > { %v1168_v36 = vsel %vm1137_vm5, %v947_v49, %v973_v46  ;;  %v462_v4 = vsel %vm7758_vm2, %v6145_v18, %v6176_v26  ;;  %v461_v49 = vsel %vm7759_vm3, %v6020_v22, %v6145_v18  ;;  %vm7761_vm0 = vcmask 539648  }
 0x119   : > { %v1873_v31 = vand.u32 4294901760, %v1168_v36  ;;  %v6263_v43 = vpack.c.bf16 %v1875_v30, %v1871_v23  ;;  %v479_v5 = vsel %vm254_vm11, %v462_v4, 0.0  ;;  %vm7762_vm2 = vmmov %vm7761_vm0  ;;  %v7764_v4 = vld [vmem:[#allocation8_spill] sm:$0xff]  ;;  %vm7765_vm3 = vcmask 269312  }
 0x11a   : > { %731 = vrot.lane.b32.xlu1 %v5844_v25, %s5206_s27  ;;  %v626_v7 = vpop.permute.xlu1 %625  ;;  %v6258_v21 = vpop.permute.xlu0 %581  ;;  %v912_v6 = vrot.slane %v479_v5, 4  ;;  %v6329_v19 = vsub.f32 %v1167_v56, %v1875_v30 }
 0x11b   : > { %729 = vrot.lane.b32.xlu0 %v5721_v3, %s5206_s27  ;;  %v6261_v39 = vpack.c.bf16 %v1873_v31, %v1869_v38  ;;  %7756 = vst [vmem:[#allocation32_spill] sm:$0xff] %v6263_v43 }
 0x11c   : > { %v7779_v62 = vand.u32 4294901760, %v6329_v19 }
 0x11d   : > { %7755 = vst [vmem:[#allocation31_spill] sm:$0xff] %v6261_v39  ;;  %4743 = vmatprep.subr.bf16.mxu1 %v6261_v39 }
 0x11e   : > { %779 = vrot.lane.b32.xlu1 %v6180_v32, %s5207_s28  ;;  %v404_v20 = vpop.permute.xlu1 %403  ;;  %v6270_v44 = vpop.permute.xlu0 %627  ;;  %4745 = vmatpush1.bf16.msra.mxu1 %v6263_v43 }
 0x11f   : > { %777 = vrot.lane.b32.xlu0 %v5844_v25, %s5207_s28  ;;  %v416_v22 = vsel %vm7762_vm2, %v6123_v52, %v404_v20  ;;  %v594_v52 = vsel %vm7765_vm3, %v7764_v4, %v6241_v42  ;;  %vm7769_vm2 = vcmask 277504  }
 0x122   : > { %683 = vrot.lane.b32.xlu1 %v5844_v25, %s5208_s29  ;;  %v535_v2 = vpop.permute.xlu1 %534  ;;  %v6280_v46 = vpop.permute.xlu0 %405  ;;  %v523_v25 = vsel %vm325_vm13, %v506_v0, 0.0  ;;  %v478_v0 = vsel %vm253_vm12, %v461_v49, 0.0 }
 0x123   : > { %681 = vrot.lane.b32.xlu0 %v5721_v3, %s5208_s29  ;;  %7757 = vst [vmem:[#allocation33_spill] sm:$0xff] %v6280_v46  ;;  %v417_v40 = vsel %vm7761_vm0, %v404_v20, %v6280_v46  ;;  %v524_v3 = vsel %vm326_vm15, %v507_v60, 0.0  ;;  %v974_v29 = vrot.slane %v523_v25, 4  ;;  %vm7766_vm0 = vcmp.ge.s32.totalorder %v5967_v17, 2  ;;  %v7768_v25 = vld [vmem:[#allocation10_spill] sm:$0xff] }
 0x124   : > { %v433_v20 = vsel %vm7766_vm0, %v416_v22, 0.0  ;;  %v911_v26 = vrot.slane %v478_v0, 4  ;;  %v975_v54 = vrot.slane %v524_v3, 4  ;;  %v611_v3 = vsel %vm251_vm1, %v594_v52, 0.0 }
 0x125   : > { %v999_v52 = vrot.slane %v611_v3, 4 }
 0x126   : > { %685 = vrot.lane.b32.xlu1 %v6180_v32, %s5208_s29  ;;  %v936_v18 = vpop.permute.xlu1 %935  ;;  %v6303_v13 = vpop.permute.xlu0 %536 }
 0x127   : > { %733 = vrot.lane.b32.xlu0 %v6180_v32, %s5206_s27  ;;  %v948_v46 = vsel %vm943_vm14, %v934_v58, %v936_v18  ;;  %v434_v32 = vsel %vm7763_vm7, %v417_v40, 0.0  ;;  %v549_v40 = vsel %vm7769_vm2, %v7768_v25, %v535_v2  ;;  %v6341_v25 = vsub.f32 %v1168_v36, %v1873_v31 }
 0x128   : > { %v6318_v49 = vsel %vm1137_vm5, %v948_v46, %v974_v29  ;;  %v1161_v5 = vsel %vm1137_vm5, %v434_v32, %v912_v6  ;;  %v6334_v29 = vsel %vm1137_vm5, %v433_v20, %v911_v26  ;;  %v7770_v32 = vld [vmem:[#allocation9_spill] sm:$0xff]  ;;  %vm7771_vm7 = vcmask 252928  }
 0x129   : > { %v2522_v22 = vand.u32 4294901760, %v6318_v49  ;;  %v642_v6 = vsel %vm7771_vm7, %v7770_v32, %v626_v7  ;;  %v566_v56 = vsel %vm170_vm4, %v549_v40, 0.0  ;;  %v2516_v30 = vand.u32 4294901760, %v1161_v5  ;;  %vm7773_vm0 = vmmov %vm7771_vm7 }
 0x12a   : > { %v6320_v60 = vpop.permute.xlu1 %583  ;;  %v6322_v58 = vpop.permute.xlu0 %937  ;;  %v595_v36 = vsel %vm7765_vm3, %v6241_v42, %v6258_v21  ;;  %v2518_v31 = vand.u32 4294901760, %v6334_v29  ;;  %v6359_v20 = vsub.f32 %v6244_v57, %v1869_v38  ;;  %v550_v57 = vsel %vm7769_vm2, %v535_v2, %v6303_v13 }
 0x12b   : > { %7767 = vst [vmem:[#allocation8_spill] sm:$0xff] %v6322_v58  ;;  %v949_v4 = vsel %vm943_vm14, %v936_v18, %v6322_v58  ;;  %v612_v38 = vsel %vm252_vm8, %v595_v36, 0.0  ;;  %vm7778_vm7 = vcmask 261120   ;;  %v567_v36 = vsel %vm171_vm9, %v550_v57, 0.0 }
 0x12c   : > { %v6337_v46 = vsel %vm1137_vm5, %v949_v4, %v975_v54  ;;  %v6352_v54 = vsub.f32 %v6248_v28, %v1871_v23  ;;  %v643_v4 = vsel %vm7773_vm0, %v626_v7, %v6270_v44  ;;  %v660_v28 = vsel %vm323_vm10, %v642_v6, 0.0  ;;  %vm7781_vm3 = vmmov %vm7778_vm7 }
 0x12d   : > { %v7611_v0 = vand.u32 4294901760, %v6337_v46  ;;  %v1176_v23 = vsel %vm1137_vm5, %v566_v56, %v999_v52  ;;  %v6371_v42 = vpack.c.bf16 %v2522_v22, %v2518_v31  ;;  %v661_v6 = vsel %vm324_vm6, %v643_v4, 0.0  ;;  %v7777_v56 = vld [vmem:[#allocation11_spill] sm:$0xff] }
 0x12e   : > { %v6347_v18 = vpop.permute.xlu1 %629  ;;  %v6349_v26 = vpop.permute.xlu0 %585  ;;  %v1062_v2 = vrot.slane %v660_v28, 4  ;;  %v1879_v58 = vand.u32 4294901760, %v1176_v23  ;;  %v1000_v40 = vrot.slane %v612_v38, 4  ;;  %v1063_v61 = vrot.slane %v661_v6, 4 }
 0x12f   : > { %7772 = vst [vmem:[#allocation10_spill] sm:$0xff] %v6349_v26  ;;  %v6366_v32 = vpack.c.bf16 %v7611_v0, %v2516_v30  ;;  %7775 = vst [vmem:[#allocation34_spill] sm:$0xff] %v6371_v42  ;;  %v1998_v0 = vsub.f32 %v6329_v19, %v7779_v62  ;;  %v7780_v28 = vand.u32 4294901760, %v6341_v25  ;;  %v7782_v12 = vand.u32 4294901760, %v6352_v54 }
 0x130   : > { %v1177_v57 = vsel %vm1137_vm5, %v567_v36, %v1000_v40  ;;  %v6407_v38 = vsub.f32 %v1176_v23, %v1879_v58  ;;  %v6416_v39 = vsub.f32 %v1161_v5, %v2516_v30  ;;  %vm7784_vm0 = vcmask 269312   ;;  %v7789_v23 = vld [vmem:[#allocation12_spill] sm:$0xff] }
 0x131   : > { %7774 = vst [vmem:[#allocation9_spill] sm:$0xff] %v6366_v32  ;;  %4839 = vmatprep.subr.bf16.mxu0 %v6366_v32  ;;  %v1986_v62 = vsub.f32 %v6352_v54, %v7782_v12  ;;  %v1999_v59 = vand.u32 4294901760, %v1998_v0  ;;  %v1877_v40 = vand.u32 4294901760, %v1177_v57  ;;  %v6425_v53 = vsub.f32 %v6318_v49, %v2522_v22 }
 0x132   : > { %v1022_v7 = vpop.permute.xlu1 %1021  ;;  %v6378_v3 = vpop.permute.xlu0 %631  ;;  %4841 = vmatpush1.bf16.msra.mxu0 %v6371_v42  ;;  %v1992_v42 = vsub.f32 %v6341_v25, %v7780_v28  ;;  %vm7788_vm2 = vcmask 1039360   ;;  %v6434_v30 = vsub.f32 %v6334_v29, %v2518_v31 }
 0x133   : > { %7776 = vst [vmem:[#allocation35_spill] sm:$0xff] %v6378_v3  ;;  %v1036_v52 = vsel %vm7778_vm7, %v7777_v56, %v1022_v7  ;;  %v1987_v12 = vand.u32 4294901760, %v1986_v62  ;;  %v6436_v62 = vsub.f32 %v1177_v57, %v1877_v40  ;;  %vm7790_vm7 = vcmask 7168  }
 0x134   : > { %v6394_v4 = vsel %vm1137_vm5, %v1036_v52, %v1062_v2  ;;  %v7783_v52 = vand.u32 4294901760, %v6359_v20 }
 0x135   : > { %v1883_v43 = vand.u32 4294901760, %v6394_v4  ;;  %v6431_v5 = vpack.c.bf16 %v1999_v59, %v1987_v12 }
 0x136   : > { %v722_v35 = vpop.permute.xlu1 %721  ;;  %v6396_v56 = vpop.permute.xlu0 %1023  ;;  %v1980_v2 = vsub.f32 %v6359_v20, %v7783_v52 }
 0x137   : > { %v1037_v32 = vsel %vm7781_vm3, %v1022_v7, %v6396_v56  ;;  %v1993_v7 = vand.u32 4294901760, %v1992_v42  ;;  %v6427_v0 = vpack.c.bf16 %v1883_v43, %v1879_v58  ;;  %vm7791_vm3 = vcmask 252928  }
 0x138   : > { %v1186_v6 = vsel %vm1137_vm5, %v1037_v32, %v1063_v61  ;;  %v596_v61 = vsel %vm7784_vm0, %v6258_v21, %v6320_v60  ;;  %v1981_v52 = vand.u32 4294901760, %v1980_v2  ;;  %v738_v21 = vsel %vm7790_vm7, %v7789_v23, %v722_v35  ;;  %vm7792_vm0 = vmmov %vm7788_vm2 }
 0x139   : > { %v1881_v28 = vand.u32 4294901760, %v1186_v6  ;;  %7786 = vst [vmem:[#allocation36_spill] sm:$0xff] %v6427_v0  ;;  %v644_v59 = vsel %vm7791_vm3, %v6270_v44, %v6347_v18  ;;  %v756_v23 = vsel %vm251_vm1, %v738_v21, 0.0  ;;  %vm7799_vm1 = vcmask 15360  }
 0x13a   : > { %v770_v36 = vpop.permute.xlu1 %769  ;;  %v6414_v41 = vpop.permute.xlu0 %723  ;;  %v6443_v58 = vpack.c.bf16 %v1993_v7, %v1981_v52  ;;  %v7794_v7 = vand.u32 4294901760, %v6407_v38 }
 0x13b   : > { %v6422_v32 = vpack.c.bf16 %v1881_v28, %v1877_v40  ;;  %v784_v42 = vsel %vm7788_vm2, %v7787_v27, %v770_v36  ;;  %v613_v27 = vsel %vm253_vm12, %v596_v61, 0.0  ;;  %vm7793_vm2 = vmmov %vm7790_vm7  ;;  %vm7795_vm7 = vcmask 269312  }
 0x13c   : > { %v801_v31 = vsel %vm323_vm10, %v784_v42, 0.0  ;;  %v739_v57 = vsel %vm7793_vm2, %v722_v35, %v6414_v41  ;;  %v6463_v44 = vsub.f32 %v6407_v38, %v7794_v7  ;;  %v1001_v52 = vrot.slane %v613_v27, 4  ;;  %v7798_v27 = vld [vmem:[#allocation18_spill] sm:$0xff] }
 0x13d   : > { %7785 = vst [vmem:[#allocation11_spill] sm:$0xff] %v6422_v32  ;;  %4747 = vmatprep.subr.bf16.mxu1 %v6422_v32  ;;  %v662_v35 = vsel %vm325_vm13, %v644_v59, 0.0  ;;  %v6479_v22 = vsub.f32 %v1186_v6, %v1881_v28  ;;  %v757_v21 = vsel %vm252_vm8, %v739_v57, 0.0  ;;  %v7800_v59 = vand.u32 4294901760, %v6337_v46 }
 0x13e   : > { %v539_v2 = vpop.permute.xlu1 %538  ;;  %v6441_v49 = vpop.permute.xlu0 %771  ;;  %4749 = vmatpush1.bf16.msra.mxu1 %v6427_v0  ;;  %v1064_v28 = vrot.slane %v662_v35, 4  ;;  %vm7801_vm10 = vcmask 277504   ;;  %vm7807_vm2 = vcmp.ge.s32.totalorder %v5984_v16, 2 }
 0x13f   : > { %v785_v29 = vsel %vm7792_vm0, %v770_v36, %v6441_v49  ;;  %v597_v36 = vsel %vm7795_vm7, %v6320_v60, %v6349_v26  ;;  %v1121_v60 = vrot.slane %v801_v31, 4  ;;  %v6488_v0 = vsub.f32 %v6337_v46, %v7800_v59  ;;  %vm7802_vm8 = vmmov %vm7801_vm10  ;;  %v7803_v59 = vld [vmem:[#allocation2_spill] sm:$0xff] }
 0x140   : > { %v802_v40 = vsel %vm324_vm6, %v785_v29, 0.0  ;;  %vm7796_vm6 = vmmov %vm7791_vm3  ;;  %v551_v31 = vsel %vm7801_vm10, %v6303_v13, %v539_v2  ;;  %v6501_v46 = vsub.f32 %v6394_v4, %v1883_v43  ;;  %vm7806_vm0 = vcmp.ge.s32.totalorder %v5967_v17, 2 }
 0x141   : > { %v1122_v61 = vrot.slane %v802_v40, 4  ;;  %v645_v42 = vsel %vm7796_vm6, %v6347_v18, %v6378_v3  ;;  %v614_v18 = vsel %vm254_vm11, %v597_v36, 0.0  ;;  %v1089_v3 = vrot.slane %v756_v23, 4  ;;  %vm7805_vm3 = vmmov %vm7799_vm1 }
 0x142   : > { %v674_v29 = vpop.permute.xlu1 %673  ;;  %v6476_v7 = vpop.permute.xlu0 %540  ;;  %v663_v36 = vsel %vm326_vm15, %v645_v42, 0.0  ;;  %v1090_v23 = vrot.slane %v757_v21, 4  ;;  %v1203_v13 = vsel %vm1137_vm5, %v7803_v59, %v1121_v60  ;;  %v568_v43 = vsel %vm7806_vm0, %v551_v31, 0.0  ;;  %vm7825_vm10 = vmmov %vm7805_vm3 }
 0x143   : > { %7797 = vst [vmem:[#allocation14_spill] sm:$0xff] %v6476_v7  ;;  %v690_v40 = vsel %vm7799_vm1, %v7798_v27, %v674_v29  ;;  %v552_v57 = vsel %vm7802_vm8, %v539_v2, %v6476_v7  ;;  %v5183_v27 = vld [vmem:[%s5241_s14 + $0x10] sm:$0xff]  ;;  %v1002_v21 = vrot.slane %v614_v18, 4  ;;  %v7810_v18 = vand.u32 4294901760, %v6479_v22 }
 0x144   : > { %v708_v6 = vsel %vm170_vm4, %v690_v40, 0.0  ;;  %v1204_v12 = vsel %vm1137_vm5, %v5183_v27, %v1122_v61  ;;  %vm7804_vm4 = vcmask 261120   ;;  %v569_v4 = vsel %vm7807_vm2, %v552_v57, 0.0 }
 0x145   : > { %v1194_v14 = vsel %vm1137_vm5, %v708_v6, %v1089_v3  ;;  %v1889_v42 = vand.u32 4294901760, %v1204_v12  ;;  %v1065_v6 = vrot.slane %v663_v36, 4  ;;  %v6526_v57 = vsel %vm1137_vm5, %v568_v43, %v1001_v52 }
 0x146   : > { %v1026_v40 = vpop.permute.xlu1 %1025  ;;  %v676_v35 = vpop.permute.xlu0 %675  ;;  %v1887_v60 = vand.u32 4294901760, %v1194_v14  ;;  %v6529_v8 = vsel %vm1137_vm5, %v569_v4, %v1002_v21  ;;  %v2016_v36 = vsub.f32 %v6479_v22, %v7810_v18  ;;  %vm7816_vm7 = vcmask 7168  }
 0x147   : > { %v1038_v2 = vsel %vm7804_vm4, %v6396_v56, %v1026_v40  ;;  %v691_v7 = vsel %vm7805_vm3, %v674_v29, %v676_v35  ;;  %v1891_v29 = vand.u32 4294901760, %v1203_v13  ;;  %v2524_v56 = vand.u32 4294901760, %v6529_v8  ;;  %vm7821_vm1 = vmmov %vm7816_vm7 }
 0x148   : > { %v709_v3 = vsel %vm171_vm9, %v691_v7, 0.0  ;;  %v6521_v59 = vsel %vm1137_vm5, %v1038_v2, %v1064_v28  ;;  %vm7809_vm9 = vmmov %vm7804_vm4  ;;  %v6543_v52 = vsub.f32 %v1194_v14, %v1887_v60  ;;  %vm7817_vm6 = vcmask 1039360   ;;  %v7823_v14 = vld [vmem:[#allocation19_spill] sm:$0xff] }
 0x149   : > { %v1195_v27 = vsel %vm1137_vm5, %v709_v3, %v1090_v23  ;;  %v6541_v3 = vsub.f32 %v1204_v12, %v1889_v42  ;;  %v6546_v21 = vpack.c.bf16 %v1891_v29, %v1887_v60  ;;  %vm7851_vm4 = vcmask 777216  }
 0x14a   : > { %v1885_v61 = vand.u32 4294901760, %v1195_v27  ;;  %v726_v31 = vpop.permute.xlu1 %725  ;;  %v6523_v26 = vpop.permute.xlu0 %1027 }
 0x14b   : > { %7808 = vst [vmem:[#allocation12_spill] sm:$0xff] %v6523_v26  ;;  %v1039_v7 = vsel %vm7809_vm9, %v1026_v40, %v6523_v26  ;;  %7812 = vst [vmem:[#allocation2_spill] sm:$0xff] %v6546_v21  ;;  %v6548_v40 = vsub.f32 %v1203_v13, %v1891_v29  ;;  %v7637_v13 = vand.u32 4294901760, %v6526_v57  ;;  %v740_v60 = vsel %vm7816_vm7, %v6414_v41, %v726_v31 }
 0x14c   : > { %v6536_v23 = vsub.f32 %v1195_v27, %v1885_v61  ;;  %v1188_v28 = vsel %vm1137_vm5, %v1039_v7, %v1065_v6  ;;  %v6539_v2 = vpack.c.bf16 %v1889_v42, %v1885_v61  ;;  %v7814_v61 = vand.u32 4294901760, %v6436_v62 }
 0x14d   : > { %v2528_v4 = vand.u32 4294901760, %v1188_v28  ;;  %v7815_v42 = vand.u32 4294901760, %v6501_v46  ;;  %v7819_v41 = vand.u32 4294901760, %v6521_v59 }
 0x14e   : > { %7811 = vst [vmem:[#allocation18_spill] sm:$0xff] %v6539_v2  ;;  %v774_v18 = vpop.permute.xlu1 %773  ;;  %4751 = vmatprep.subr.bf16.mxu1 %v6539_v2  ;;  %v6552_v27 = vpop.permute.xlu0 %727  ;;  %v2004_v12 = vsub.f32 %v6436_v62, %v7814_v61  ;;  %v2011_v61 = vand.u32 4294901760, %v6463_v44 }
 0x14f   : > { %7813 = vst [vmem:[#allocation37_spill] sm:$0xff] %v6552_v27  ;;  %v2022_v6 = vsub.f32 %v6501_v46, %v7815_v42  ;;  %v786_v29 = vsel %vm7817_vm6, %v6441_v49, %v774_v18  ;;  %4753 = vmatpush1.bf16.msra.mxu1 %v6546_v21  ;;  %v6568_v7 = vpack.c.bf16 %v2528_v4, %v2524_v56  ;;  %v758_v21 = vsel %vm253_vm12, %v740_v60, 0.0  ;;  %vm7826_vm12 = vmmov %vm7817_vm6 }
 0x150   : > { %4755 = vmatprep.subr.bf16.mxu1 %v6097_v47  ;;  %v6578_v26 = vpack.c.bf16 %v7819_v41, %v7637_v13  ;;  %v741_v49 = vsel %vm7821_vm1, %v726_v31, %v6552_v27  ;;  %v2017_v47 = vand.u32 4294901760, %v2016_v36  ;;  %v803_v44 = vsel %vm325_vm13, %v786_v29, 0.0  ;;  %vm7827_vm13 = vmmov %vm7806_vm0 }
 0x151   : > { %7818 = vst [vmem:[#allocation38_spill] sm:$0xff] %v6568_v7  ;;  %4843 = vmatprep.subr.bf16.mxu0 %v6568_v7  ;;  %v7824_v41 = vand.u32 4294901760, %v6536_v23  ;;  %v2005_v29 = vand.u32 4294901760, %v2004_v12  ;;  %v2023_v27 = vand.u32 4294901760, %v2022_v6  ;;  %v759_v7 = vsel %vm254_vm11, %v741_v49, 0.0  ;;  %vm7832_vm11 = vmmov %vm7805_vm3 }
 0x152   : > { %7820 = vst [vmem:[#allocation39_spill] sm:$0xff] %v6578_v26  ;;  %v678_v42 = vpop.permute.xlu1 %677  ;;  %v6587_v43 = vpop.permute.xlu0 %775  ;;  %1947 = vmatmul.mubr.f32.vlgmr.msra.gmra.mrb[2].mxu1 %v7823_v14  ;;  %4845 = vmatpush1.bf16.msra.mxu0 %v6578_v26  ;;  %v7829_v6 = vand.u32 4294901760, %v6543_v52  ;;  %v6613_v49 = vsub.f32 %v1188_v28, %v2528_v4  ;;  %v1092_v32 = vrot.slane %v759_v7, 4  ;;  %v5184_v28 = vld [vmem:[%s5241_s14 + $0x18] sm:$0xff]  ;;  %v7834_v7 = vld [vmem:[#allocation3_spill] sm:$0xff]  ;;  %vm7853_vm0 = vcmask 793600  }
 0x153   : > { %7822 = vst [vmem:[#allocation40_spill] sm:$0xff] %v6587_v43  ;;  %v2028_v13 = vsub.f32 %v6536_v23, %v7824_v41  ;;  %v692_v36 = vsel %vm7825_vm10, %v676_v35, %v678_v42  ;;  %v787_v60 = vsel %vm7826_vm12, %v774_v18, %v6587_v43  ;;  %4757 = vmatpush1.bf16.msra.mxu1 %v6073_v55  ;;  %v7828_v35 = vand.u32 4294901760, %v6541_v3  ;;  %vm7857_vm6 = vmmov %vm7853_vm0 }
 0x154   : > { %v710_v2 = vsel %vm7827_vm13, %v692_v36, 0.0  ;;  %v804_v41 = vsel %vm326_vm15, %v787_v60, 0.0  ;;  %4759 = vmatprep.subr.bf16.mxu1 %v6443_v58  ;;  %2097 = vmatprep.mubr.f32.mxu1 %v7718_v33  ;;  %v1091_v55 = vrot.slane %v758_v21, 4  ;;  %v1123_v18 = vrot.slane %v803_v44, 4  ;;  %vm7833_vm15 = vmmov %vm7807_vm2 }
 0x155   : > { %v2040_v31 = vsub.f32 %v6541_v3, %v7828_v35  ;;  %v1124_v12 = vrot.slane %v804_v41, 4  ;;  %v2034_v17 = vsub.f32 %v6543_v52, %v7829_v6  ;;  %v4762_v58 = vpack.c.bf16 %v2017_v47, %v2005_v29 }
 0x156   : > { %v6615_v36 = vpop.permute.xlu1 %290  ;;  %v6617_v60 = vpop.permute.xlu0 %679  ;;  %v2029_v43 = vand.u32 4294901760, %v2028_v13  ;;  %v7831_v35 = vand.u32 4294901760, %v6548_v40  ;;  %v1196_v21 = vsel %vm1137_vm5, %v710_v2, %v1091_v55  ;;  %v6629_v41 = vsub.f32 %v6529_v8, %v2524_v56 }
 0x157   : > { %7830 = vst [vmem:[#allocation41_spill] sm:$0xff] %v6617_v60  ;;  %v693_v44 = vsel %vm7832_vm11, %v678_v42, %v6617_v60  ;;  %4761 = vmatpush1.bf16.msra.mxu1 %v6431_v5  ;;  %v1206_v4 = vsel %vm1137_vm5, %v5184_v28, %v1124_v12  ;;  %v4764_v47 = vpack.c.bf16 %v2023_v27, %v2011_v61  ;;  %v2041_v29 = vand.u32 4294901760, %v2040_v31 }
 0x158   : > { %v2046_v26 = vsub.f32 %v6548_v40, %v7831_v35  ;;  %v711_v13 = vsel %vm7833_vm15, %v693_v44, 0.0  ;;  %4763 = vmatprep.subr.bf16.mxu1 %v4762_v58  ;;  %v1205_v2 = vsel %vm1137_vm5, %v7834_v7, %v1123_v18  ;;  %v2536_v42 = vand.u32 4294901760, %v1206_v4 }
 0x159   : > { %v1197_v55 = vsel %vm1137_vm5, %v711_v13, %v1092_v32  ;;  %v2035_v6 = vand.u32 4294901760, %v2034_v17  ;;  %v7835_v5 = vand.u32 4294901760, %v6521_v59  ;;  %v2534_v56 = vand.u32 4294901760, %v1196_v21 }
 0x15a   : > { %v2532_v8 = vand.u32 4294901760, %v1197_v55  ;;  %v6641_v35 = vpop.permute.xlu1 %362  ;;  %v6643_v16 = vpop.permute.xlu0 %292  ;;  %v4766_v27 = vpack.c.bf16 %v2041_v29, %v2029_v43  ;;  %v7651_v61 = vand.u32 4294901760, %v6434_v30  ;;  %v2047_v31 = vand.u32 4294901760, %v2046_v26 }
 0x15b   : > { %v6639_v12 = vsub.f32 %v6521_v59, %v7835_v5  ;;  %4765 = vmatpush1.bf16.msra.mxu1 %v4764_v47  ;;  %v7836_v32 = vand.u32 4294901760, %v6488_v0  ;;  %v7648_v17 = vand.u32 4294901760, %v6613_v49  ;;  %v7837_v59 = vand.u32 4294901760, %v6526_v57 }
 0x15c   : > { %v2538_v44 = vand.u32 4294901760, %v1205_v2  ;;  %v6655_v28 = vsub.f32 %v1197_v55, %v2532_v8  ;;  %4767 = vmatprep.subr.bf16.mxu1 %v4766_v27  ;;  %v7838_v43 = vand.u32 4294901760, %v6416_v39  ;;  %v6660_v26 = vpack.c.bf16 %v2536_v42, %v2532_v8 }
 0x15d   : > { %v2639_v18 = vsub.f32 %v6488_v0, %v7836_v32  ;;  %v6653_v58 = vsub.f32 %v6526_v57, %v7837_v59  ;;  %v6662_v47 = vsub.f32 %v1206_v4, %v2536_v42  ;;  %v4768_v29 = vpack.c.bf16 %v2047_v31, %v2035_v6 }
 0x15e   : > { %v2627_v13 = vsub.f32 %v6416_v39, %v7838_v43  ;;  %7839 = vst [vmem:[#allocation3_spill] sm:$0xff] %v6660_v26  ;;  %v7650_v7 = vand.u32 4294901760, %v6629_v41  ;;  %v7840_v5 = vand.u32 4294901760, %v6425_v53  ;;  %v7649_v32 = vand.u32 4294901760, %v6639_v12  ;;  %v6671_v27 = vpop.permute.xlu1 %218  ;;  %v6673_v59 = vpop.permute.xlu0 %364  ;;  %4847 = vmatprep.subr.bf16.mxu0 %v6660_v26 }
 0x15f   : > { %v6669_v55 = vsub.f32 %v1196_v21, %v2534_v56  ;;  %v6675_v43 = vpack.c.bf16 %v2538_v44, %v2534_v56  ;;  %4769 = vmatpush1.bf16.msra.mxu1 %v4768_v29  ;;  %v2640_v4 = vand.u32 4294901760, %v2639_v18  ;;  %v2663_v42 = vsub.f32 %v6613_v49, %v7648_v17 }
 0x160   : > { %v2645_v57 = vsub.f32 %v6425_v53, %v7840_v5  ;;  %v7653_v6 = vand.u32 4294901760, %v6655_v28  ;;  %v7654_v8 = vand.u32 4294901760, %v6653_v58  ;;  %v6683_v21 = vsub.f32 %v1205_v2, %v2538_v44 }
 0x161   : > { %4849 = vmatpush1.bf16.msra.mxu0 %v6675_v43  ;;  %v7841_v56 = vpack.c.bf16 %v6030_v24, %v5952_v50  ;;  %v2633_v31 = vsub.f32 %v6434_v30, %v7651_v61  ;;  %v2628_v18 = vand.u32 4294901760, %v2627_v13  ;;  %v2651_v29 = vsub.f32 %v6629_v41, %v7650_v7 }
 0x162   : > { %4851 = vmatprep.subr.bf16.mxu0 %v6251_v48  ;;  %v7652_v2 = vand.u32 4294901760, %v6662_v47  ;;  %v2669_v44 = vsub.f32 %v6639_v12, %v7649_v32  ;;  %2099 = vmatmul.mubr.f32.vlgmr.msra.gmra.mrb[2].mxu1 %v5619_v1  ;;  %v4774_v48 = vpack.c.bf16 %v6341_v25, %v6359_v20  ;;  %v2646_v13 = vand.u32 4294901760, %v2645_v57 }
 0x163   : > { %4771 = vmatprep.subr.bf16.mxu1 %v7841_v56  ;;  %v6701_v24 = vpop.permute.xlu1 %849  ;;  %v7842_v56 = vpack.c.bf16 %v5989_v45, %v5912_v63  ;;  %v4854_v17 = vpack.c.bf16 %v2640_v4, %v2628_v18  ;;  %v2664_v32 = vand.u32 4294901760, %v2663_v42  ;;  %v2675_v7 = vsub.f32 %v6655_v28, %v7653_v6  ;;  %2201 = vmatprep.mubr.f32.mxu1 %v7718_v33 }
 0x164   : > { %v6703_v5 = vpop.permute.xlu0 %220  ;;  %2594 = vmatmul.mubr.f32.vlgmr.msra.gmra.mrb[2].mxu0 %v7823_v14  ;;  %v2634_v61 = vand.u32 4294901760, %v2633_v31  ;;  %v2657_v57 = vsub.f32 %v6653_v58, %v7654_v8  ;;  %v7655_v50 = vand.u32 4294901760, %v6683_v21  ;;  %v4776_v63 = vpack.c.bf16 %v6329_v19, %v6352_v54 }
 0x165   : > { %4773 = vmatpush1.bf16.msra.mxu1 %v7842_v56  ;;  %4853 = vmatpush1.bf16.msra.mxu0 %v6232_v51  ;;  %v2652_v45 = vand.u32 4294901760, %v2651_v29  ;;  %v2687_v4 = vsub.f32 %v6662_v47, %v7652_v2  ;;  %v4778_v18 = vpack.c.bf16 %v6479_v22, %v6436_v62  ;;  %v2676_v2 = vand.u32 4294901760, %v2675_v7 }
 0x166   : > { %4775 = vmatprep.subr.bf16.mxu1 %v4774_v48  ;;  %4855 = vmatprep.subr.bf16.mxu0 %v4854_v17  ;;  %v4856_v31 = vpack.c.bf16 %v2646_v13, %v2634_v61  ;;  %v2670_v48 = vand.u32 4294901760, %v2669_v44  ;;  %v7843_v17 = vand.u32 4294901760, %v6669_v55  ;;  %v2658_v6 = vand.u32 4294901760, %v2657_v57 }
 0x167   : > { %2744 = vmatprep.mubr.f32.mxu0 %v7718_v33  ;;  %v4858_v29 = vpack.c.bf16 %v2664_v32, %v2652_v45  ;;  %v2693_v61 = vsub.f32 %v6683_v21, %v7655_v50  ;;  %v4780_v44 = vpack.c.bf16 %v6501_v46, %v6407_v38  ;;  %v2688_v13 = vand.u32 4294901760, %v2687_v4  ;;  %v7860_v50 = vld [vmem:[#allocation11_spill] sm:$0xff] }
 0x168   : > { %v6726_v51 = vpop.permute.xlu1 %452  ;;  %v6728_v42 = vpop.permute.xlu0 %851  ;;  %v2681_v56 = vsub.f32 %v6669_v55, %v7843_v17  ;;  %v4860_v17 = vpack.c.bf16 %v2670_v48, %v2658_v6  ;;  %v156_v4 = vadd.s32 768, %v5363_v9  ;;  %v157_v48 = vadd.s32 896, %v5363_v9 }
 0x169   : > { %4777 = vmatpush1.bf16.msra.mxu1 %v4776_v63  ;;  %4857 = vmatpush1.bf16.msra.mxu0 %v4856_v31  ;;  %v4782_v63 = vpack.c.bf16 %v6541_v3, %v6536_v23  ;;  %v4862_v57 = vpack.c.bf16 %v2688_v13, %v2676_v2  ;;  %v2694_v45 = vand.u32 4294901760, %v2693_v61  ;;  %v4784_v31 = vpack.c.bf16 %v6548_v40, %v6543_v52 }
 0x16a   : > { %4779 = vmatprep.subr.bf16.mxu1 %v4778_v18  ;;  %4859 = vmatprep.subr.bf16.mxu0 %v4858_v29  ;;  %v2682_v32 = vand.u32 4294901760, %v2681_v56  ;;  %v158_v56 = vadd.s32 1024, %v5363_v9  ;;  %v7844_v2 = vpack.c.bf16 %v6190_v34, %v6131_v11  ;;  %v6761_v61 = vand.u32 31, %v156_v4  ;;  %v7846_v11 = vld [vmem:[#allocation28_spill] sm:$0xff]  ;;  %v7847_v34 = vld [vmem:[#allocation25_spill] sm:$0xff] }
 0x16b   : > { %v4870_v9 = vpack.c.bf16 %v6488_v0, %v6416_v39  ;;  %v7852_v4 = vld [vmem:[#allocation20_spill] sm:$0xff]  ;;  %vm7859_vm1 = vcmask 801792   ;;  %vm7862_vm13 = vcmask 269312   ;;  %vm7864_vm11 = vcmask 785408  }
 0x16c   : > { %v6741_v8 = vpop.permute.xlu1 %497  ;;  %v4864_v18 = vpack.c.bf16 %v2694_v45, %v2682_v32  ;;  %v7848_v32 = vpack.c.bf16 %v7846_v11, %v7847_v34  ;;  %vm327_vm8 = vcmp.le.s32.totalorder %v6761_v61, 30  ;;  %v7850_v45 = vld [vmem:[#allocation21_spill] sm:$0xff]  ;;  %vm255_vm3 = vcmp.ge.s32.totalorder %v6761_v61, 1 }
 0x16d   : > { %v6745_v7 = vpop.permute.xlu0 %454  ;;  %4781 = vmatpush1.bf16.msra.mxu1 %v4780_v44  ;;  %4861 = vmatpush1.bf16.msra.mxu0 %v4860_v17  ;;  %v6771_v17 = vand.u32 31, %v157_v48  ;;  %v301_v48 = vsel %vm7853_vm0, %v7852_v4, %v6615_v36  ;;  %v4874_v11 = vpack.c.bf16 %v6613_v49, %v6629_v41  ;;  %vm174_vm7 = vcmp.ge.s32.totalorder %v6761_v61, 2 }
 0x16e   : > { %4783 = vmatprep.subr.bf16.mxu1 %v4782_v63  ;;  %4863 = vmatprep.subr.bf16.mxu0 %v4862_v57  ;;  %v6773_v63 = vand.u32 31, %v158_v56  ;;  %v7849_v57 = vld [vmem:[#allocation31_spill] sm:$0xff]  ;;  %v318_v14 = vsel %vm255_vm3, %v301_v48, 0.0 }
 0x16f   : > { %vm256_vm2 = vcmp.ge.s32.totalorder %v6771_v17, 1  ;;  %vm328_vm10 = vcmp.le.s32.totalorder %v6771_v17, 30  ;;  %vm175_vm15 = vcmp.ge.s32.totalorder %v6771_v17, 2  ;;  %v823_v60 = vrot.slane %v318_v14, 4 }
 0x170   : > { %v6750_v29 = vpop.permute.xlu1 %407  ;;  %vm257_vm9 = vcmp.ge.s32.totalorder %v6773_v63, 1  ;;  %vm329_vm12 = vcmp.le.s32.totalorder %v6773_v63, 30  ;;  %vm176_vm0 = vcmp.ge.s32.totalorder %v6773_v63, 2  ;;  %v4880_v14 = vpack.c.bf16 %v6683_v21, %v6669_v55  ;;  %v7974_v63 = vld [vmem:[#allocation5_spill] sm:$0xff] }
 0x171   : > { %v6752_v6 = vpop.permute.xlu0 %499  ;;  %4785 = vmatpush1.bf16.msra.mxu1 %v4784_v31  ;;  %4865 = vmatpush1.bf16.msra.mxu0 %v4864_v18  ;;  %v373_v31 = vsel %vm7851_vm4, %v7850_v45, %v6641_v35  ;;  %v4872_v18 = vpack.c.bf16 %v6425_v53, %v6434_v30  ;;  %v7858_v45 = vld [vmem:[#allocation24_spill] sm:$0xff] }
 0x172   : > { %4787 = vmatprep.subr.bf16.mxu1 %v6121_v15  ;;  %4867 = vmatprep.subr.bf16.mxu0 %v7844_v2  ;;  %v390_v34 = vsel %vm327_vm8, %v373_v31, 0.0  ;;  %v229_v4 = vsel %vm7859_vm1, %v7858_v45, %v6671_v27  ;;  %v7861_v31 = vld [vmem:[#allocation10_spill] sm:$0xff]  ;;  %v320_v45 = vsel %vm257_vm9, %v6643_v16, 0.0 }
 0x174   : > { %2204 = vmatmul.mubr.f32.vlgmr.msra.gmra.mrb[2].mxu1 %v7734_v37  ;;  %v6763_v44 = vpop.permute.xlu1 %939  ;;  %2746 = vmatmul.mubr.f32.vlgmr.msra.gmra.mrb[2].mxu0 %v5619_v1 }
 0x175   : > { %7845 = vst [vmem:[#allocation42_spill] sm:$0xff] %v6763_v44  ;;  %v6765_v13 = vpop.permute.xlu0 %409  ;;  %4789 = vmatpush1.bf16.msra.mxu1 %v6138_v10  ;;  %4869 = vmatpush1.bf16.msra.mxu0 %v7848_v32  ;;  %v302_v32 = vsel %vm7857_vm6, %v6615_v36, %v6643_v16  ;;  %v4876_v36 = vpack.c.bf16 %v6639_v12, %v6653_v58  ;;  %v7867_v44 = vld [vmem:[#allocation36_spill] sm:$0xff]  ;;  %v246_v16 = vsel %vm174_vm7, %v229_v4, 0.0  ;;  %v7868_v10 = vld [vmem:[#allocation35_spill] sm:$0xff]  ;;  %vm7869_vm6 = vcmask 252928  }
 0x176   : > { %4791 = vmatprep.subr.bf16.mxu1 %v7849_v57  ;;  %4871 = vmatprep.subr.bf16.mxu0 %v4870_v9  ;;  %v7856_v9 = vld [vmem:[#allocation32_spill] sm:$0xff]  ;;  %v319_v57 = vsel %vm256_vm2, %v302_v32, 0.0  ;;  %v7871_v4 = vand.u32 4294901760, %v6352_v54  ;;  %v248_v54 = vsel %vm176_vm0, %v6703_v5, 0.0 }
 0x177   : > { %2290 = vmatprep.mubr.f32.mxu1 %v7718_v33  ;;  %2848 = vmatprep.mubr.f32.mxu0 %v7718_v33 }
 0x178   : > { %v6791_v56 = vpop.permute.xlu1 %587 }
 0x179   : > { %7854 = vst [vmem:[#allocation28_spill] sm:$0xff] %v6791_v56  ;;  %v6793_v2 = vpop.permute.xlu0 %941  ;;  %4793 = vmatpush1.bf16.msra.mxu1 %v7856_v9  ;;  %4873 = vmatpush1.bf16.msra.mxu0 %v4872_v18  ;;  %v598_v18 = vsel %vm7862_vm13, %v7861_v31, %v6791_v56  ;;  %v7863_v9 = vld [vmem:[#allocation27_spill] sm:$0xff]  ;;  %v4878_v31 = vpack.c.bf16 %v6662_v47, %v6655_v28  ;;  %v7870_v56 = vld [vmem:[#allocation18_spill] sm:$0xff]  ;;  %vm7877_vm13 = vcmask 277504  }
 0x17a   : > { %7855 = vst [vmem:[#allocation25_spill] sm:$0xff] %v6793_v2  ;;  %4795 = vmatprep.subr.bf16.mxu1 %v7860_v50  ;;  %4875 = vmatprep.subr.bf16.mxu0 %v4874_v11  ;;  %v860_v11 = vsel %vm7864_vm11, %v7863_v9, %v6701_v24  ;;  %v886_v2 = vrot.slane %v390_v34, 4  ;;  %v374_v9 = vsel %vm7851_vm4, %v6641_v35, %v6673_v59  ;;  %vm7887_vm4 = vcmask 261120  }
 0x17b   : > { %v230_v35 = vsel %vm7859_vm1, %v6671_v27, %v6703_v5  ;;  %v7875_v27 = vld [vmem:[#allocation2_spill] sm:$0xff]  ;;  %v7879_v5 = vld [vmem:[#allocation16_spill] sm:$0xff]  ;;  %vm7899_vm1 = vcmask 515072  }
 0x17c   : > { %v6826_v48 = vpop.permute.xlu1 %633  ;;  %v6848_v32 = vsel %vm1137_vm5, %v860_v11, %v886_v2  ;;  %v391_v2 = vsel %vm328_vm10, %v374_v9, 0.0 }
 0x17d   : > { %7865 = vst [vmem:[#allocation21_spill] sm:$0xff] %v6826_v48  ;;  %v6828_v50 = vpop.permute.xlu0 %589  ;;  %4797 = vmatpush1.bf16.msra.mxu1 %v7867_v44  ;;  %4877 = vmatpush1.bf16.msra.mxu0 %v4876_v36  ;;  %v615_v44 = vsel %vm255_vm3, %v598_v18, 0.0  ;;  %v646_v34 = vsel %vm7869_vm6, %v7868_v10, %v6826_v48  ;;  %v7872_v18 = vand.u32 4294901760, %v6329_v19  ;;  %v825_v10 = vrot.slane %v320_v45, 4 }
 0x17e   : > { %7866 = vst [vmem:[#allocation20_spill] sm:$0xff] %v6828_v50  ;;  %4799 = vmatprep.subr.bf16.mxu1 %v7870_v56  ;;  %4879 = vmatprep.subr.bf16.mxu0 %v4878_v31  ;;  %v824_v50 = vrot.slane %v319_v57, 4  ;;  %v6860_v56 = vsel %vm1137_vm5, %v246_v16, %v823_v60  ;;  %v1003_v19 = vrot.slane %v615_v44, 4  ;;  %v664_v57 = vsel %vm327_vm8, %v646_v34, 0.0  ;;  %v7876_v60 = vld [vmem:[#allocation14_spill] sm:$0xff]  ;;  %v7878_v16 = vld [vmem:[#allocation23_spill] sm:$0xff] }
 0x17f   : > { %v4808_v36 = vpack.c.bf16 %v7872_v18, %v7871_v4  ;;  %v3161_v9 = vand.u32 4294901760, %v6848_v32  ;;  %v247_v4 = vsel %vm175_vm15, %v230_v35, 0.0  ;;  %v7880_v44 = vand.u32 4294901760, %v6359_v20 }
 0x180   : > { %v6864_v11 = vpop.permute.xlu1 %542  ;;  %v7881_v34 = vand.u32 4294901760, %v6341_v25  ;;  %v7883_v35 = vand.u32 4294901760, %v6434_v30  ;;  %v887_v20 = vrot.slane %v391_v2, 4  ;;  %v6901_v25 = vsel %vm1137_vm5, %v248_v54, %v825_v10  ;;  %v7886_v10 = vld [vmem:[#allocation12_spill] sm:$0xff]  ;;  %v7888_v54 = vld [vmem:[#allocation6_spill] sm:$0xff] }
 0x181   : > { %7873 = vst [vmem:[#allocation24_spill] sm:$0xff] %v6864_v11  ;;  %v6866_v31 = vpop.permute.xlu0 %635  ;;  %4801 = vmatpush1.bf16.msra.mxu1 %v7875_v27  ;;  %v553_v45 = vsel %vm7877_vm13, %v7876_v60, %v6864_v11  ;;  %4881 = vmatpush1.bf16.msra.mxu0 %v4880_v14  ;;  %v3157_v60 = vand.u32 4294901760, %v6860_v56  ;;  %v392_v14 = vsel %vm329_vm12, %v6673_v59, 0.0  ;;  %v7882_v11 = vld [vmem:[#allocation15_spill] sm:$0xff]  ;;  %v7885_v59 = vld [vmem:[#allocation22_spill] sm:$0xff]  ;;  %v6910_v30 = vsel %vm1137_vm5, %v247_v4, %v824_v50  ;;  %v7890_v4 = vld [vmem:[#allocation9_spill] sm:$0xff] }
 0x182   : > { %7874 = vst [vmem:[#allocation10_spill] sm:$0xff] %v6866_v31  ;;  %4803 = vmatprep.subr.bf16.mxu1 %v7878_v16  ;;  %v570_v18 = vsel %vm174_vm7, %v553_v45, 0.0  ;;  %4883 = vmatprep.subr.bf16.mxu0 %v7879_v5  ;;  %v4806_v27 = vpack.c.bf16 %v7881_v34, %v7880_v44  ;;  %v7884_v45 = vand.u32 4294901760, %v6425_v53  ;;  %v1066_v44 = vrot.slane %v664_v57, 4 }
 0x183   : > { %v1180_v16 = vsel %vm1137_vm5, %v570_v18, %v1003_v19  ;;  %v861_v53 = vsel %vm7864_vm11, %v6701_v24, %v6728_v42  ;;  %v888_v19 = vrot.slane %v392_v14, 4  ;;  %v6920_v57 = vsub.f32 %v6848_v32, %v3161_v9 }
 0x184   : > { %2294 = vmatmul.mubr.f32.vlgmr.msra.gmra.mrb[2].mxu1 %v7882_v11  ;;  %v6898_v5 = vpack.c.bf16 %v7884_v45, %v7883_v35  ;;  %v3173_v34 = vand.u32 4294901760, %v1180_v16  ;;  %v6903_v48 = vpop.permute.xlu1 %1029  ;;  %2851 = vmatmul.mubr.f32.vlgmr.msra.gmra.mrb[2].mxu0 %v7734_v37  ;;  %v6928_v24 = vsub.f32 %v6860_v56, %v3157_v60  ;;  %v7891_v45 = vand.u32 4294901760, %v6436_v62  ;;  %v7895_v56 = vld [vmem:[#allocation4_spill] sm:$0xff] }
 0x185   : > { %v6905_v31 = vpop.permute.xlu0 %544  ;;  %4805 = vmatpush1.bf16.msra.mxu1 %v7885_v59  ;;  %v1040_v2 = vsel %vm7887_vm4, %v7886_v10, %v6903_v48  ;;  %4885 = vmatpush1.bf16.msra.mxu0 %v7888_v54  ;;  %7889 = vst [vmem:[#allocation27_spill] sm:$0xff] %v6920_v57  ;;  %v7893_v32 = vand.u32 4294901760, %v6416_v39  ;;  %v3803_v10 = vand.u32 4294901760, %v6901_v25  ;;  %vm7896_vm6 = vcmask 531456   ;;  %vm7919_vm4 = vmmov %vm7899_vm1 }
 0x186   : > { %4807 = vmatprep.subr.bf16.mxu1 %v4806_v27  ;;  %v6922_v18 = vsub.f32 %v1180_v16, %v3173_v34  ;;  %v1189_v50 = vsel %vm1137_vm5, %v1040_v2, %v1066_v44  ;;  %4887 = vmatprep.subr.bf16.mxu0 %v7890_v4  ;;  %v7892_v27 = vand.u32 4294901760, %v6479_v22  ;;  %v7894_v16 = vand.u32 4294901760, %v6488_v0  ;;  %vm7910_vm13 = vmmov %vm7896_vm6 }
 0x187   : > { %2412 = vmatprep.mubr.f32.mxu1 %v7718_v33  ;;  %v3177_v35 = vand.u32 4294901760, %v1189_v50  ;;  %2937 = vmatprep.mubr.f32.mxu0 %v7718_v33  ;;  %v463_v2 = vsel %vm7896_vm6, %v7895_v56, %v6726_v51  ;;  %v6947_v62 = vsel %vm1137_vm5, %v861_v53, %v887_v20  ;;  %v6962_v56 = vsel %vm1137_vm5, %v6728_v42, %v888_v19  ;;  %v7898_v20 = vld [vmem:[#allocation29_spill] sm:$0xff]  ;;  %v7900_v53 = vld [vmem:[#allocation38_spill] sm:$0xff] }
 0x188   : > { %v4810_v14 = vpack.c.bf16 %v7892_v27, %v7891_v45  ;;  %v6939_v44 = vpack.c.bf16 %v7894_v16, %v7893_v32  ;;  %v7897_v27 = vld [vmem:[#allocation34_spill] sm:$0xff]  ;;  %v6957_v32 = vpop.permute.xlu1 %637  ;;  %v6975_v16 = vsel %vm255_vm3, %v463_v2, 0.0  ;;  %v3159_v42 = vand.u32 4294901760, %v6947_v62 }
 0x189   : > { %v6949_v22 = vpop.permute.xlu0 %1031  ;;  %4809 = vmatpush1.bf16.msra.mxu1 %v4808_v36  ;;  %v6952_v45 = vpack.c.bf16 %v3177_v35, %v3173_v34  ;;  %v6954_v0 = vsub.f32 %v1189_v50, %v3177_v35  ;;  %4889 = vmatpush1.bf16.msra.mxu0 %v7897_v27  ;;  %v508_v36 = vsel %vm7899_vm1, %v7898_v20, %v6741_v8  ;;  %v7901_v34 = vand.u32 4294901760, %v6407_v38 }
 0x18a   : > { %4811 = vmatprep.subr.bf16.mxu1 %v4810_v14  ;;  %4891 = vmatprep.subr.bf16.mxu0 %v7900_v53  ;;  %v7902_v50 = vand.u32 4294901760, %v6501_v46  ;;  %v6979_v59 = vpack.c.bf16 %v3161_v9, %v3157_v60  ;;  %v7903_v14 = vand.u32 4294901760, %v6910_v30  ;;  %v6987_v38 = vsub.f32 %v6901_v25, %v3803_v10  ;;  %v7907_v25 = vld [vmem:[#allocation39_spill] sm:$0xff] }
 0x18b   : > { %v7666_v19 = vand.u32 4294901760, %v6954_v0  ;;  %v7905_v2 = vand.u32 4294901760, %v6536_v23  ;;  %v6998_v9 = vsel %vm327_vm8, %v508_v36, 0.0  ;;  %v7912_v39 = vand.u32 4294901760, %v6548_v40  ;;  %v7915_v36 = vld [vmem:[#allocation37_spill] sm:$0xff] }
 0x18c   : > { %v4812_v35 = vpack.c.bf16 %v7902_v50, %v7901_v34  ;;  %v6984_v20 = vsub.f32 %v6910_v30, %v7903_v14  ;;  %7904 = vst [vmem:[#allocation35_spill] sm:$0xff] %v6987_v38  ;;  %v7906_v34 = vand.u32 4294901760, %v6541_v3  ;;  %v7004_v14 = vpop.permute.xlu1 %731  ;;  %v7909_v3 = vand.u32 4294901760, %v6920_v57 }
 0x18d   : > { %v6989_v46 = vpop.permute.xlu0 %729  ;;  %v3316_v60 = vsub.f32 %v6954_v0, %v7666_v19  ;;  %4893 = vmatpush1.bf16.msra.mxu0 %v7907_v25  ;;  %v7911_v19 = vand.u32 4294901760, %v6543_v52  ;;  %vm7916_vm11 = vcmask 7168   ;;  %v7043_v40 = vsel %vm257_vm9, %v6745_v7, 0.0  ;;  %v7941_v52 = vld [vmem:[#allocation17_spill] sm:$0xff] }
 0x18e   : > { %4813 = vmatpush1.bf16.msra.mxu1 %v4812_v35  ;;  %v4814_v50 = vpack.c.bf16 %v7906_v34, %v7905_v2  ;;  %v7908_v35 = vand.u32 4294901760, %v6922_v18  ;;  %v7012_v2 = vsub.f32 %v6920_v57, %v7909_v3  ;;  %v464_v34 = vsel %vm7910_vm13, %v6726_v51, %v6745_v7  ;;  %4895 = vmatprep.subr.bf16.mxu0 %v6660_v26 }
 0x18f   : > { %v4816_v37 = vpack.c.bf16 %v7912_v39, %v7911_v19  ;;  %v7913_v3 = vand.u32 4294901760, %v6962_v56  ;;  %v742_v38 = vsel %vm7916_vm11, %v7915_v36, %v6989_v46  ;;  %v7917_v51 = vand.u32 4294901760, %v6629_v41 }
 0x190   : > { %v3304_v23 = vsub.f32 %v6922_v18, %v7908_v35  ;;  %4815 = vmatprep.subr.bf16.mxu1 %v4814_v50  ;;  %v7024_v35 = vsub.f32 %v6947_v62, %v3159_v42  ;;  %v7918_v50 = vand.u32 4294901760, %v6613_v49  ;;  %v3317_v39 = vand.u32 4294901760, %v3316_v60  ;;  %v7920_v49 = vld [vmem:[#allocation40_spill] sm:$0xff] }
 0x191   : > { %v7028_v57 = vpack.c.bf16 %v7913_v3, %v3803_v10  ;;  %v509_v10 = vsel %vm7919_vm4, %v6741_v8, %v6752_v6  ;;  %v778_v62 = vpop.permute.xlu0 %777  ;;  %v481_v41 = vsel %vm256_vm2, %v464_v34, 0.0  ;;  %vm7921_vm6 = vcmask 1039360   ;;  %4897 = vmatpush1.bf16.msra.mxu0 %v6675_v43  ;;  %v7924_v34 = vld [vmem:[#allocation7_spill] sm:$0xff] }
 0x192   : > { %v7037_v26 = vpack.c.bf16 %v7918_v50, %v7917_v51  ;;  %4817 = vmatpush1.bf16.msra.mxu1 %v4816_v37  ;;  %v788_v19 = vsel %vm7921_vm6, %v7920_v49, %v778_v62  ;;  %v7922_v7 = vand.u32 4294901760, %v6653_v58  ;;  %v7923_v36 = vand.u32 4294901760, %v6639_v12  ;;  %4899 = vmatprep.subr.bf16.mxu0 %v7924_v34  ;;  %v7934_v34 = vld [vmem:[#allocation10_spill] sm:$0xff] }
 0x193   : > { %7914 = vst [vmem:[#allocation14_spill] sm:$0xff] %v7028_v57  ;;  %4819 = vmatprep.subr.bf16.mxu1 %v6121_v15  ;;  %v3305_v8 = vand.u32 4294901760, %v3304_v23  ;;  %v760_v37 = vsel %vm255_vm3, %v742_v38, 0.0  ;;  %v805_v60 = vsel %vm327_vm8, %v788_v19, 0.0  ;;  %v7925_v51 = vand.u32 4294901760, %v6655_v28  ;;  %v7083_v28 = vpop.permute.xlu1 %779  ;;  %v7944_v57 = vld [vmem:[#allocation30_spill] sm:$0xff] }
 0x194   : > { %v7058_v3 = vpack.c.bf16 %v7923_v36, %v7922_v7  ;;  %v7926_v50 = vand.u32 4294901760, %v6662_v47  ;;  %v7927_v58 = vand.u32 4294901760, %v6669_v55  ;;  %v7928_v12 = vand.u32 4294901760, %v6683_v21  ;;  %v7931_v55 = vld [vmem:[#allocation20_spill] sm:$0xff]  ;;  %2941 = vmatmul.mubr.f32.vlgmr.msra.gmra.mrb[2].mxu0 %v7882_v11 }
 0x195   : > { %v526_v38 = vsel %vm328_vm10, %v509_v10, 0.0  ;;  %vm7929_vm8 = vcmask 539648   ;;  %v1125_v19 = vrot.slane %v805_v60, 4  ;;  %2414 = vmatmul.mubr.f32.vlgmr.msra.gmra.mrb[2].mxu1 %v5619_v1  ;;  %v7085_v47 = vpack.c.bf16 %v3317_v39, %v3305_v8  ;;  %v7932_v36 = vld [vmem:[#allocation28_spill] sm:$0xff]  ;;  %v7939_v39 = vld [vmem:[#allocation33_spill] sm:$0xff]  ;;  %4901 = vmatpush1.bf16.msra.mxu0 %v7944_v57 }
 0x196   : > { %v7069_v15 = vpack.c.bf16 %v7926_v50, %v7925_v51  ;;  %v7075_v49 = vpack.c.bf16 %v7928_v12, %v7927_v58  ;;  %v419_v23 = vsel %vm7929_vm8, %v6750_v29, %v6765_v13  ;;  %v914_v7 = vrot.slane %v481_v41, 4  ;;  %v7935_v51 = vld [vmem:[#allocation21_spill] sm:$0xff]  ;;  %v682_v50 = vpop.permute.xlu0 %681  ;;  %v7937_v58 = vld [vmem:[#allocation26_spill] sm:$0xff]  ;;  %vm7940_vm13 = vmmov %vm7929_vm8  ;;  %4903 = vmatprep.subr.bf16.mxu0 %v6939_v44  ;;  %2500 = vmatprep.mubr.f32.mxu1 %v7718_v33 }
 0x197   : > { %7930 = vst [vmem:[#allocation23_spill] sm:$0xff] %v7085_v47  ;;  %vm7933_vm3 = vcmask 269312   ;;  %vm7936_vm1 = vcmask 252928   ;;  %4821 = vmatpush1.bf16.msra.mxu1 %v7937_v58  ;;  %v7938_v60 = vand.u32 4294901760, %v6910_v30  ;;  %v418_v41 = vsel %vm7940_vm13, %v7939_v39, %v6750_v29  ;;  %v7942_v47 = vld [vmem:[#allocation41_spill] sm:$0xff]  ;;  %v7945_v58 = vld [vmem:[#allocation31_spill] sm:$0xff]  ;;  %3059 = vmatprep.mubr.f32.mxu0 %v7718_v33 }
 0x198   : > { %v599_v21 = vsel %vm7933_vm3, %v7932_v36, %v7931_v55  ;;  %v647_v10 = vsel %vm7936_vm1, %v7935_v51, %v7934_v34  ;;  %v1093_v8 = vrot.slane %v760_v37, 4  ;;  %v1207_v36 = vsel %vm1137_vm5, %v7941_v52, %v1125_v19  ;;  %4823 = vmatprep.subr.bf16.mxu1 %v7945_v58  ;;  %v7946_v29 = vld [vmem:[#allocation25_spill] sm:$0xff]  ;;  %v7947_v52 = vld [vmem:[#allocation42_spill] sm:$0xff]  ;;  %v7948_v44 = vld [vmem:[#allocation32_spill] sm:$0xff] }
 0x199   : > { %v7097_v12 = vpack.c.bf16 %v3159_v42, %v7938_v60  ;;  %vm7943_vm11 = vcmask 15360   ;;  %v977_v11 = vrot.slane %v526_v38, 4  ;;  %v436_v30 = vsel %vm175_vm15, %v419_v23, 0.0  ;;  %v7951_v58 = vld [vmem:[#allocation24_spill] sm:$0xff]  ;;  %4905 = vmatpush1.bf16.msra.mxu0 %v6898_v5 }
 0x19a   : > { %v694_v51 = vsel %vm7943_vm11, %v7942_v47, %v682_v50  ;;  %v3185_v42 = vand.u32 4294901760, %v1207_v36  ;;  %v951_v37 = vsel %vm943_vm14, %v7947_v52, %v7946_v29  ;;  %v616_v57 = vsel %vm256_vm2, %v599_v21, 0.0  ;;  %4907 = vmatprep.subr.bf16.mxu0 %v7037_v26 }
 0x19b   : > { %v712_v60 = vsel %vm174_vm7, %v694_v51, 0.0  ;;  %v665_v38 = vsel %vm328_vm10, %v647_v10, 0.0  ;;  %4825 = vmatpush1.bf16.msra.mxu1 %v7948_v44  ;;  %vm7949_vm4 = vcmask 7168   ;;  %v789_v51 = vsel %vm7921_vm6, %v778_v62, %v7083_v28  ;;  %v7146_v62 = vpop.permute.xlu1 %683 }
 0x19c   : > { %v1198_v23 = vsel %vm1137_vm5, %v712_v60, %v1093_v8  ;;  %v7123_v19 = vsub.f32 %v1207_v36, %v3185_v42  ;;  %v743_v39 = vsel %vm7949_vm4, %v6989_v46, %v7004_v14  ;;  %v435_v21 = vsel %vm174_vm7, %v418_v41, 0.0  ;;  %v7950_v8 = vld [vmem:[#allocation8_spill] sm:$0xff]  ;;  %v7953_v46 = vld [vmem:[#allocation11_spill] sm:$0xff]  ;;  %vm7962_vm7 = vmmov %vm7936_vm1 }
 0x19d   : > { %v3181_v47 = vand.u32 4294901760, %v1198_v23  ;;  %v7136_v10 = vsel %vm329_vm12, %v6752_v6, 0.0  ;;  %v950_v36 = vsel %vm943_vm14, %v7950_v8, %v7947_v52  ;;  %vm7952_vm8 = vcmask 277504   ;;  %4827 = vmatprep.subr.bf16.mxu1 %v7953_v46  ;;  %vm7955_vm14 = vmmov %vm7943_vm11  ;;  %4909 = vmatpush1.bf16.msra.mxu0 %v7058_v3 }
 0x19e   : > { %v554_v60 = vsel %vm7952_vm8, %v7951_v58, %v6905_v31  ;;  %v1163_v61 = vsel %vm1137_vm5, %v436_v30, %v914_v7  ;;  %v1172_v41 = vsel %vm1137_vm5, %v951_v37, %v977_v11  ;;  %v1004_v6 = vrot.slane %v616_v57, 4  ;;  %v7954_v11 = vld [vmem:[#allocation36_spill] sm:$0xff]  ;;  %4911 = vmatprep.subr.bf16.mxu0 %v7069_v15 }
 0x19f   : > { %v7150_v44 = vsub.f32 %v1198_v23, %v3181_v47  ;;  %v1067_v52 = vrot.slane %v665_v38, 4  ;;  %v761_v8 = vsel %vm256_vm2, %v743_v39, 0.0  ;;  %v806_v5 = vsel %vm328_vm10, %v789_v51, 0.0  ;;  %4829 = vmatpush1.bf16.msra.mxu1 %v7954_v11  ;;  %v7960_v11 = vld [vmem:[#allocation2_spill] sm:$0xff]  ;;  %vm7967_vm10 = vmmov %vm7949_vm4 }
 0x1a0   : > { %v7157_v58 = vpack.c.bf16 %v3185_v42, %v3181_v47  ;;  %v571_v46 = vsel %vm175_vm15, %v554_v60, 0.0  ;;  %v695_v30 = vsel %vm7955_vm14, %v682_v50, %v7146_v62  ;;  %v3339_v26 = vand.u32 4294901760, %v7123_v19  ;;  %v7958_v47 = vld [vmem:[#allocation18_spill] sm:$0xff] }
 0x1a1   : > { %v7674_v7 = vand.u32 4294901760, %v7150_v44  ;;  %v7956_v37 = vrot.slane %v6998_v9, 4  ;;  %v3163_v38 = vand.u32 4294901760, %v1163_v61  ;;  %v3167_v23 = vand.u32 4294901760, %v1172_v41  ;;  %4831 = vmatprep.subr.bf16.mxu1 %v7958_v47  ;;  %4913 = vmatpush1.bf16.msra.mxu0 %v7075_v49 }
 0x1a2   : > { %vm7957_vm2 = vcmask 261120   ;;  %v1094_v39 = vrot.slane %v761_v8, 4  ;;  %v1126_v50 = vrot.slane %v806_v5, 4  ;;  %v7677_v51 = vand.u32 4294901760, %v6984_v20 }
 0x1a3   : > { %v1171_v57 = vsel %vm1137_vm5, %v950_v36, %v7956_v37  ;;  %v1041_v42 = vsel %vm7957_vm2, %v6903_v48, %v6949_v22  ;;  %v3328_v9 = vsub.f32 %v7150_v44, %v7674_v7  ;;  %v7959_v36 = vrot.slane %v6975_v16, 4  ;;  %4833 = vmatpush1.bf16.msra.mxu1 %v7960_v11 }
 0x1a4   : > { %v1181_v48 = vsel %vm1137_vm5, %v571_v46, %v1004_v6  ;;  %v713_v3 = vsel %vm175_vm15, %v695_v30, 0.0  ;;  %v3340_v15 = vsub.f32 %v7123_v19, %v3339_v26  ;;  %v3169_v8 = vand.u32 4294901760, %v1171_v57  ;;  %4931 = vmatprep.subr.bf16.mxu1 %v7097_v12  ;;  %v7961_v46 = vld [vmem:[#allocation16_spill] sm:$0xff]  ;;  %v5185_v30 = vld [vmem:[%s5241_s14 + $0x20] sm:$0xff]  ;;  %3061 = vmatmul.mubr.f32.vlgmr.msra.gmra.mrb[2].mxu0 %v5619_v1  ;;  %vm7970_vm15 = vmmov %vm7943_vm11 }
 0x1a5   : > { %v1162_v60 = vsel %vm1137_vm5, %v435_v21, %v7959_v36  ;;  %v1190_v5 = vsel %vm1137_vm5, %v1041_v42, %v1067_v52  ;;  %v7675_v37 = vand.u32 4294901760, %v7024_v35  ;;  %v3329_v47 = vand.u32 4294901760, %v3328_v9  ;;  %4915 = vmatprep.subr.bf16.mxu0 %v7961_v46  ;;  %3147 = vmatprep.mubr.f32.mxu0 %v7718_v33 }
 0x1a6   : > { %v7189_v7 = vsub.f32 %v1163_v61, %v3163_v38  ;;  %v7191_v16 = vsub.f32 %v1172_v41, %v3167_v23  ;;  %v3341_v17 = vand.u32 4294901760, %v3340_v15  ;;  %v3171_v6 = vand.u32 4294901760, %v1181_v48  ;;  %2502 = vmatmul.mubr.f32.vlgmr.msra.gmra.mrb[2].mxu1 %v5619_v1  ;;  %4917 = vmatpush1.bf16.msra.mxu0 %v7888_v54  ;;  %v7971_v61 = vld [vmem:[#allocation19_spill] sm:$0xff] }
 0x1a7   : > { %v1199_v52 = vsel %vm1137_vm5, %v713_v3, %v1094_v39  ;;  %v1208_v42 = vsel %vm1137_vm5, %v5185_v30, %v1126_v50  ;;  %v3165_v41 = vand.u32 4294901760, %v1162_v60  ;;  %v3175_v9 = vand.u32 4294901760, %v1190_v5  ;;  %4933 = vmatpush1.bf16.msra.mxu1 %v6979_v59  ;;  %4919 = vmatprep.subr.bf16.mxu0 %v7890_v4 }
 0x1a8   : > { %v7204_v49 = vpack.c.bf16 %v3167_v23, %v3163_v38  ;;  %v7206_v36 = vpack.c.bf16 %v3341_v17, %v3329_v47  ;;  %v915_v15 = vrot.slane %v7043_v40, 4  ;;  %v978_v11 = vrot.slane %v7136_v10, 4  ;;  %3235 = vmatprep.mubr.f32.mxu1 %v7718_v33 }
 0x1a9   : > { %v3250_v39 = vsub.f32 %v6984_v20, %v7677_v51  ;;  %v3262_v50 = vsub.f32 %v7024_v35, %v7675_v37  ;;  %v7218_v38 = vpack.c.bf16 %v3169_v8, %v3165_v41  ;;  %v7220_v23 = vsub.f32 %v1171_v57, %v3169_v8 }
 0x1aa   : > { %4935 = vmatprep.subr.bf16.mxu1 %v7204_v49  ;;  %v3179_v40 = vand.u32 4294901760, %v1199_v52  ;;  %v3183_v10 = vand.u32 4294901760, %v1208_v42  ;;  %v7224_v3 = vsub.f32 %v1181_v48, %v3171_v6  ;;  %v648_v47 = vsel %vm7962_vm7, %v7934_v34, %v6957_v32  ;;  %4921 = vmatpush1.bf16.msra.mxu0 %v7897_v27 }
 0x1ab   : > { %v7676_v17 = vand.u32 4294901760, %v7189_v7  ;;  %v7678_v57 = vand.u32 4294901760, %v7191_v16  ;;  %v7233_v8 = vsub.f32 %v1190_v5, %v3175_v9  ;;  %v7235_v54 = vpack.c.bf16 %v3175_v9, %v3171_v6  ;;  %4937 = vmatpush1.bf16.msra.mxu1 %v7218_v38  ;;  %4923 = vmatprep.subr.bf16.mxu0 %v7900_v53 }
 0x1ac   : > { %v7963_v48 = vand.u32 4294901760, %v6922_v18  ;;  %v7964_v46 = vand.u32 4294901760, %v6954_v0  ;;  %v7965_v4 = vand.u32 4294901760, %v7150_v44  ;;  %v7248_v34 = vsub.f32 %v1162_v60, %v3165_v41 }
 0x1ad   : > { %v437_v5 = vsel %vm176_vm0, %v6765_v13, 0.0  ;;  %v7966_v6 = vand.u32 4294901760, %v6928_v24  ;;  %v3269_v37 = vand.u32 4294901760, %v7012_v2  ;;  %4939 = vmatprep.subr.bf16.mxu1 %v7235_v54  ;;  %v3251_v60 = vand.u32 4294901760, %v3250_v39  ;;  %v734_v39 = vpop.permute.xlu0 %733 }
 0x1ae   : > { %v7242_v30 = vpack.c.bf16 %v7964_v46, %v7963_v48  ;;  %v7246_v32 = vpack.c.bf16 %v3339_v26, %v7965_v4  ;;  %v7681_v48 = vand.u32 4294901760, %v7220_v23  ;;  %v7261_v26 = vpack.c.bf16 %v3183_v10, %v3179_v40  ;;  %4925 = vmatpush1.bf16.msra.mxu0 %v7907_v25 }
 0x1af   : > { %v3256_v9 = vsub.f32 %v6928_v24, %v7966_v6  ;;  %v3263_v41 = vand.u32 4294901760, %v3262_v50  ;;  %v617_v13 = vsel %vm257_vm9, %v7931_v55, 0.0  ;;  %v666_v46 = vsel %vm329_vm12, %v648_v47, 0.0  ;;  %4941 = vmatpush1.bf16.msra.mxu1 %v6952_v45 }
 0x1b0   : > { %v3274_v2 = vsub.f32 %v7189_v7, %v7676_v17  ;;  %v3286_v27 = vsub.f32 %v7191_v16, %v7678_v57  ;;  %v7275_v4 = vsub.f32 %v1199_v52, %v3179_v40  ;;  %v7277_v50 = vsub.f32 %v1208_v42, %v3183_v10  ;;  %4943 = vmatprep.subr.bf16.mxu1 %v7261_v26  ;;  %v686_v57 = vpop.permute.xlu1 %685 }
 0x1b1   : > { %v7680_v55 = vand.u32 4294901760, %v7224_v3  ;;  %v7679_v6 = vand.u32 4294901760, %v7233_v8  ;;  %v7682_v47 = vand.u32 4294901760, %v7248_v34  ;;  %v1164_v53 = vsel %vm1137_vm5, %v437_v5, %v915_v15 }
 0x1b2   : > { %v1173_v17 = vsel %vm1137_vm5, %v7946_v29, %v978_v11  ;;  %v3257_v51 = vand.u32 4294901760, %v3256_v9  ;;  %v3292_v52 = vsub.f32 %v7220_v23, %v7681_v48  ;;  %v1005_v42 = vrot.slane %v617_v13, 4  ;;  %v7968_v11 = vld [vmem:[#allocation3_spill] sm:$0xff] }
 0x1b3   : > { %v572_v40 = vsel %vm176_vm0, %v6905_v31, 0.0  ;;  %v4946_v15 = vpack.c.bf16 %v3263_v41, %v3251_v60  ;;  %v1068_v10 = vrot.slane %v666_v46, 4  ;;  %v744_v29 = vsel %vm7967_vm10, %v7004_v14, %v734_v39  ;;  %4927 = vmatprep.subr.bf16.mxu0 %v7968_v11  ;;  %4945 = vmatpush1.bf16.msra.mxu1 %v7157_v58 }
 0x1b4   : > { %v3275_v5 = vand.u32 4294901760, %v3274_v2  ;;  %v3287_v9 = vand.u32 4294901760, %v3286_v27  ;;  %v3298_v13 = vsub.f32 %v7224_v3, %v7680_v55  ;;  %v3310_v31 = vsub.f32 %v7233_v8, %v7679_v6  ;;  %4929 = vmatpush1.bf16.msra.mxu0 %v6675_v43 }
 0x1b5   : > { %v3321_v25 = vand.u32 4294901760, %v7275_v4  ;;  %v3333_v60 = vand.u32 4294901760, %v7277_v50  ;;  %v7969_v41 = vand.u32 4294901760, %v6962_v56  ;;  %v3809_v46 = vand.u32 4294901760, %v1164_v53  ;;  %4947 = vmatprep.subr.bf16.mxu1 %v4946_v15 }
 0x1b6   : > { %v3812_v2 = vand.u32 4294901760, %v1173_v17  ;;  %v3280_v27 = vsub.f32 %v7248_v34, %v7682_v47  ;;  %v807_v39 = vsel %vm329_vm12, %v7083_v28, 0.0  ;;  %v762_v11 = vsel %vm257_vm9, %v744_v29, 0.0  ;;  %3241 = vmatmul.mubr.f32.vlgmr.msra.gmra.mrb[4].mxu1 %v7971_v61  ;;  %vm7992_vm12 = vmmov %vm7957_vm2 }
 0x1b7   : > { %v7308_v14 = vsub.f32 %v6962_v56, %v7969_v41  ;;  %v4948_v56 = vpack.c.bf16 %v3269_v37, %v3257_v51  ;;  %v3293_v41 = vand.u32 4294901760, %v3292_v52  ;;  %v1182_v6 = vsel %vm1137_vm5, %v572_v40, %v1005_v42  ;;  %3149 = vmatmul.mubr.f32.vlgmr.msra.gmra.mrb[2].mxu0 %v5619_v1  ;;  %3391 = vmatprep.mubr.f32.mxu1 %v7718_v33 }
 0x1b8   : > { %v1191_v55 = vsel %vm1137_vm5, %v6949_v22, %v1068_v10  ;;  %v696_v48 = vsel %vm7970_vm15, %v7146_v62, %v686_v57  ;;  %v5210_v47 = vmov 0.0|0.0   ;;  %v4950_v28 = vpack.c.bf16 %v3287_v9, %v3275_v5  ;;  %v7972_v57 = vld [vmem:[#allocation35_spill] sm:$0xff]  ;;  %v7973_v10 = vld [vmem:[#allocation14_spill] sm:$0xff] }
 0x1b9   : > { %5026 = vmatprep.subr.bf16.mxu0 %v5210_v47  ;;  %v3299_v29 = vand.u32 4294901760, %v3298_v13  ;;  %v3311_v21 = vand.u32 4294901760, %v3310_v31  ;;  %v3322_v43 = vsub.f32 %v7275_v4, %v3321_v25  ;;  %v3334_v51 = vsub.f32 %v7277_v50, %v3333_v60  ;;  %4949 = vmatpush1.bf16.msra.mxu1 %v4948_v56 }
 0x1ba   : > { %v1127_v22 = vrot.slane %v807_v39, 4  ;;  %v1095_v37 = vrot.slane %v762_v11, 4  ;;  %v3281_v62 = vand.u32 4294901760, %v3280_v27  ;;  %v3888_v52 = vand.u32 4294901760, %v7972_v57  ;;  %5028 = vmatpush3.bf16.msra.mxu0 %v7973_v10  ;;  %4951 = vmatprep.subr.bf16.mxu1 %v4950_v28 }
 0x1bb   : > { %v3895_v42 = vand.u32 4294901760, %v7308_v14  ;;  %v7336_v40 = vsub.f32 %v1173_v17, %v3812_v2  ;;  %v714_v15 = vsel %vm176_vm0, %v696_v48, 0.0  ;;  %v7341_v5 = vsub.f32 %v1164_v53, %v3809_v46  ;;  %5029 = vmatprep.subr.bf16.mxu0 %v5210_v47  ;;  %vm7993_vm0 = vmmov %vm7957_vm2 }
 0x1bc   : > { %v3815_v9 = vand.u32 4294901760, %v1182_v6  ;;  %v3818_v13 = vand.u32 4294901760, %v1191_v55  ;;  %v4952_v31 = vpack.c.bf16 %v3293_v41, %v3281_v62  ;;  %v7345_v27 = vpack.c.bf16 %v3812_v2, %v3809_v46 }
 0x1bd   : > { %v4954_v39 = vpack.c.bf16 %v3311_v21, %v3299_v29  ;;  %v3323_v17 = vand.u32 4294901760, %v3322_v43  ;;  %v3335_v11 = vand.u32 4294901760, %v3334_v51  ;;  %vm5211_vm9 = vmmov 0  }
 0x1be   : > { %4544 = vmatprep.mubr.msk.f32.mxu0 %vm5211_vm9, %v7718_v33  ;;  %v1209_v48 = vsel %vm1137_vm5, %v7974_v63, %v1127_v22  ;;  %v1200_v53 = vsel %vm1137_vm5, %v714_v15, %v1095_v37  ;;  %4953 = vmatpush1.bf16.msra.mxu1 %v4952_v31  ;;  %v3896_v56 = vsub.f32 %v7308_v14, %v3895_v42  ;;  %v3909_v46 = vand.u32 4294901760, %v7336_v40  ;;  %v7975_v37 = vld [vmem:[#allocation23_spill] sm:$0xff]  ;;  %vm7991_vm5 = vmmov %vm7957_vm2 }
 0x1bf   : > { %5031 = vmatpush3.bf16.msra.mxu0 %v7345_v27  ;;  %4955 = vmatprep.subr.bf16.mxu1 %v4954_v39  ;;  %v3889_v21 = vsub.f32 %v7972_v57, %v3888_v52  ;;  %v3902_v2 = vand.u32 4294901760, %v7341_v5  ;;  %v7361_v41 = vsub.f32 %v1182_v6, %v3815_v9  ;;  %v7363_v28 = vsub.f32 %v1191_v55, %v3818_v13 }
 0x1c0   : > { %5032 = vmatprep.subr.bf16.mxu0 %v5210_v47  ;;  %v3824_v29 = vand.u32 4294901760, %v1209_v48  ;;  %v3821_v43 = vand.u32 4294901760, %v1200_v53  ;;  %v7366_v51 = vpack.c.bf16 %v3818_v13, %v3815_v9  ;;  %v4958_v22 = vpack.c.bf16 %v3335_v11, %v3323_v17 }
 0x1c1   : > { %v3897_v62 = vand.u32 4294901760, %v3896_v56  ;;  %v3910_v15 = vsub.f32 %v7336_v40, %v3909_v46  ;;  %v3903_v55 = vsub.f32 %v7341_v5, %v3902_v2  ;;  %v3916_v6 = vand.u32 4294901760, %v7361_v41 }
 0x1c2   : > { %4957 = vmatpush1.bf16.msra.mxu1 %v7975_v37  ;;  %v4962_v9 = vpack.c.bf16 %v7024_v35, %v6984_v20  ;;  %v3890_v13 = vand.u32 4294901760, %v3889_v21  ;;  %v7380_v31 = vsub.f32 %v1209_v48, %v3824_v29  ;;  %v7382_v39 = vsub.f32 %v1200_v53, %v3821_v43  ;;  %v7976_v48 = vld [vmem:[#allocation27_spill] sm:$0xff] }
 0x1c3   : > { %5034 = vmatpush3.bf16.msra.mxu0 %v7366_v51  ;;  %4959 = vmatprep.subr.bf16.mxu1 %v4958_v22  ;;  %v7384_v17 = vpack.c.bf16 %v3824_v29, %v3821_v43  ;;  %v3923_v11 = vand.u32 4294901760, %v7363_v28  ;;  %v3911_v63 = vand.u32 4294901760, %v3910_v15  ;;  %v3917_v56 = vsub.f32 %v7361_v41, %v3916_v6 }
 0x1c4   : > { %5035 = vmatprep.subr.bf16.mxu0 %v5210_v47  ;;  %v4964_v53 = vpack.c.bf16 %v7976_v48, %v6928_v24  ;;  %v5039_v21 = vpack.c.bf16 %v3897_v62, %v3890_v13  ;;  %v3904_v29 = vand.u32 4294901760, %v3903_v55  ;;  %v3930_v43 = vand.u32 4294901760, %v7382_v39 }
 0x1c5   : > { %v3924_v22 = vsub.f32 %v7363_v28, %v3923_v11  ;;  %v3937_v37 = vand.u32 4294901760, %v7380_v31  ;;  %v4968_v62 = vpack.c.bf16 %v7220_v23, %v7248_v34  ;;  %v3918_v55 = vand.u32 4294901760, %v3917_v56 }
 0x1c6   : > { %4961 = vmatpush1.bf16.msra.mxu1 %v7206_v36  ;;  %v4966_v36 = vpack.c.bf16 %v7191_v16, %v7189_v7  ;;  %v5042_v15 = vpack.c.bf16 %v3911_v63, %v3904_v29  ;;  %v4974_v56 = vpack.c.bf16 %v7277_v50, %v7275_v4 }
 0x1c7   : > { %5037 = vmatpush3.bf16.msra.mxu0 %v7384_v17  ;;  %4963 = vmatprep.subr.bf16.mxu1 %v4962_v9  ;;  %v4970_v9 = vpack.c.bf16 %v7233_v8, %v7224_v3  ;;  %v3925_v13 = vand.u32 4294901760, %v3924_v22 }
 0x1c8   : > { %5038 = vmatprep.subr.bf16.mxu0 %v5210_v47 }
 0x1c9   : > { %3393 = vmatmul.mubr.f32.vlgmr.msra.gmra.mrb[4].mxu1 %v5619_v1  ;;  %v5045_v63 = vpack.c.bf16 %v3925_v13, %v3918_v55  ;;  %v7979_v55 = vld [vmem:[#allocation13_spill] sm:$0xff]  ;;  %v7980_v13 = vand.u32 4294901760, %v6984_v20 }
 0x1ca   : > { %4965 = vmatpush1.bf16.msra.mxu1 %v4964_v53  ;;  %4545 = vmatmul.mubr.f32.vlgmr.msra.gmra.mrb[4].mxu0 %v7971_v61  ;;  %v3931_v53 = vsub.f32 %v7382_v39, %v3930_v43  ;;  %v3938_v61 = vsub.f32 %v7380_v31, %v3937_v37 }
 0x1cb   : > { %5040 = vmatpush3.bf16.msra.mxu0 %v5039_v21  ;;  %4967 = vmatprep.subr.bf16.mxu1 %v4966_v36  ;;  %v7977_v36 = vpack.c.bf16 %v6954_v0, %v6922_v18  ;;  %v5054_v18 = vpack.c.bf16 %v7336_v40, %v7341_v5  ;;  %v5057_v0 = vpack.c.bf16 %v7363_v28, %v7361_v41 }
 0x1cc   : > { %5041 = vmatprep.subr.bf16.mxu0 %v5210_v47  ;;  %3495 = vmatprep.mubr.f32.mxu1 %v7718_v33  ;;  %v3932_v21 = vand.u32 4294901760, %v3931_v53  ;;  %v3939_v29 = vand.u32 4294901760, %v3938_v61  ;;  %v7981_v53 = vand.u32 4294901760, %v7024_v35  ;;  %v7985_v35 = vand.u32 4294901760, %v7189_v7 }
 0x1cd   : > { %4563 = vmatprep.mubr.msk.f32.mxu0 %vm5211_vm9, %v7718_v33  ;;  %v7989_v7 = vand.u32 4294901760, %v7224_v3  ;;  %v5075_v3 = vpack.c.bf16 %v3895_v42, %v3888_v52 }
 0x1ce   : > { %4969 = vmatpush1.bf16.msra.mxu1 %v4968_v62  ;;  %v5048_v22 = vpack.c.bf16 %v3939_v29, %v3932_v21  ;;  %v7978_v62 = vpack.c.bf16 %v7123_v19, %v7150_v44  ;;  %v4994_v61 = vpack.c.bf16 %v7981_v53, %v7980_v13 }
 0x1cf   : > { %5043 = vmatpush3.bf16.msra.mxu0 %v5042_v15  ;;  %4971 = vmatprep.subr.bf16.mxu1 %v4970_v9  ;;  %v5051_v15 = vpack.c.bf16 %v7308_v14, %v7972_v57  ;;  %v5060_v9 = vpack.c.bf16 %v7380_v31, %v7382_v39 }
 0x1d0   : > { %5044 = vmatprep.subr.bf16.mxu0 %v5210_v47 }
 0x1d2   : > { %4973 = vmatpush1.bf16.msra.mxu1 %v7977_v36  ;;  %v7982_v36 = vand.u32 4294901760, %v6928_v24  ;;  %v7987_v24 = vand.u32 4294901760, %v7248_v34 }
 0x1d3   : > { %5046 = vmatpush3.bf16.msra.mxu0 %v5045_v63  ;;  %4975 = vmatprep.subr.bf16.mxu1 %v4974_v56 }
 0x1d4   : > { %5047 = vmatprep.subr.bf16.mxu0 %v5210_v47 }
 0x1d6   : > { %4977 = vmatpush1.bf16.msra.mxu1 %v7978_v62  ;;  %v7984_v62 = vld [vmem:[#allocation15_spill] sm:$0xff] }
 0x1d7   : > { %5049 = vmatpush3.bf16.msra.mxu0 %v5048_v22  ;;  %4979 = vmatprep.subr.bf16.mxu1 %v7097_v12  ;;  %v7983_v22 = vand.u32 4294901760, %v7976_v48  ;;  %v7988_v48 = vand.u32 4294901760, %v7220_v23  ;;  %v5006_v23 = vpack.c.bf16 %v3333_v60, %v3321_v25 }
 0x1d8   : > { %5050 = vmatprep.subr.bf16.mxu0 %v5210_v47 }
 0x1d9   : > { %3498 = vmatmul.mubr.f32.vlgmr.msra.gmra.mrb[4].mxu1 %v7979_v55  ;;  %v4996_v20 = vpack.c.bf16 %v7983_v22, %v7982_v36 }
 0x1da   : > { %4981 = vmatpush1.bf16.msra.mxu1 %v6979_v59  ;;  %4564 = vmatmul.mubr.f32.vlgmr.msra.gmra.mrb[4].mxu0 %v5619_v1 }
 0x1db   : > { %5052 = vmatpush3.bf16.msra.mxu0 %v5051_v15  ;;  %4983 = vmatprep.subr.bf16.mxu1 %v7204_v49  ;;  %v7986_v15 = vand.u32 4294901760, %v7191_v16  ;;  %v7990_v16 = vand.u32 4294901760, %v7233_v8 }
 0x1dc   : > { %5053 = vmatprep.subr.bf16.mxu0 %v5210_v47  ;;  %3584 = vmatprep.mubr.f32.mxu1 %v7718_v33 }
 0x1dd   : > { %4582 = vmatprep.mubr.msk.f32.mxu0 %vm5211_vm9, %v7718_v33 }
 0x1de   : > { %4985 = vmatpush1.bf16.msra.mxu1 %v7218_v38  ;;  %v1558_v19 = vpop.f32.mrb[0].mxu1 }
 0x1df   : > { %5055 = vmatpush3.bf16.msra.mxu0 %v5054_v18  ;;  %4987 = vmatprep.subr.bf16.mxu1 %v7235_v54  ;;  %v1856_v44 = vpop.f32.mrb[0].mxu0  ;;  %v1560_v56 = vpop.f32.mrb[1].mxu1  ;;  %v4998_v18 = vpack.c.bf16 %v7986_v15, %v7985_v35 }
 0x1e0   : > { %5056 = vmatprep.subr.bf16.mxu0 %v5210_v47  ;;  %v7456_v63 = vadd.f32 %v1856_v44, %v1558_v19  ;;  %v1858_v21 = vpop.f32.mrb[1].mxu0  ;;  %v5002_v19 = vpack.c.bf16 %v7990_v16, %v7989_v7 }
 0x1e1   : > { %v7459_v29 = vadd.f32 %v1858_v21, %v1560_v56 }
 0x1e2   : > { %4989 = vmatpush1.bf16.msra.mxu1 %v6952_v45 }
 0x1e3   : > { %5058 = vmatpush3.bf16.msra.mxu0 %v5057_v0  ;;  %4991 = vmatprep.subr.bf16.mxu1 %v7261_v26  ;;  %v5000_v0 = vpack.c.bf16 %v7988_v48, %v7987_v24 }
 0x1e4   : > { %5059 = vmatprep.subr.bf16.mxu0 %v5210_v47 }
 0x1e6   : > { %4993 = vmatpush1.bf16.msra.mxu1 %v7157_v58 }
 0x1e7   : > { %5061 = vmatpush3.bf16.msra.mxu0 %v5060_v9  ;;  %4995 = vmatprep.subr.bf16.mxu1 %v4994_v61 }
 0x1e8   : > { %5062 = vmatprep.subr.bf16.mxu0 %v5210_v47 }
 0x1e9   : > { %3588 = vmatmul.mubr.f32.vlgmr.msra.gmra.mrb[4].mxu1 %v7984_v62 }
 0x1ea   : > { %4997 = vmatpush1.bf16.msra.mxu1 %v4996_v20  ;;  %4583 = vmatmul.mubr.f32.vlgmr.msra.gmra.mrb[4].mxu0 %v7979_v55 }
 0x1eb   : > { %5064 = vmatpush3.bf16.msra.mxu0 %v7973_v10  ;;  %4999 = vmatprep.subr.bf16.mxu1 %v4998_v18 }
 0x1ec   : > { %5065 = vmatprep.subr.bf16.mxu0 %v5210_v47  ;;  %3706 = vmatprep.mubr.f32.mxu1 %v7718_v33 }
 0x1ed   : > { %4601 = vmatprep.mubr.msk.f32.mxu0 %vm5211_vm9, %v7718_v33 }
 0x1ee   : > { %5001 = vmatpush1.bf16.msra.mxu1 %v5000_v0 }
 0x1ef   : > { %5067 = vmatpush3.bf16.msra.mxu0 %v7345_v27  ;;  %5003 = vmatprep.subr.bf16.mxu1 %v5002_v19 }
 0x1f0   : > { %5068 = vmatprep.subr.bf16.mxu0 %v5210_v47 }
 0x1f2   : > { %5005 = vmatpush1.bf16.msra.mxu1 %v7242_v30 }
 0x1f3   : > { %5070 = vmatpush3.bf16.msra.mxu0 %v7366_v51  ;;  %5007 = vmatprep.subr.bf16.mxu1 %v5006_v23 }
 0x1f4   : > { %5071 = vmatprep.subr.bf16.mxu0 %v5210_v47 }
 0x1f6   : > { %5009 = vmatpush1.bf16.msra.mxu1 %v7246_v32 }
 0x1f7   : > { %5073 = vmatpush3.bf16.msra.mxu0 %v7384_v17  ;;  %5011 = vmatprep.subr.bf16.mxu1 %v7097_v12  ;;  %v5078_v12 = vpack.c.bf16 %v3909_v46, %v3902_v2 }
 0x1f8   : > { %5074 = vmatprep.subr.bf16.mxu0 %v5210_v47 }
 0x1f9   : > { %3708 = vmatmul.mubr.f32.vlgmr.msra.gmra.mrb[4].mxu1 %v5619_v1 }
 0x1fa   : > { %5013 = vmatpush1.bf16.msra.mxu1 %v6979_v59  ;;  %4602 = vmatmul.mubr.f32.vlgmr.msra.gmra.mrb[4].mxu0 %v7984_v62  ;;  %v5081_v59 = vpack.c.bf16 %v3923_v11, %v3916_v6 }
 0x1fb   : > { %5076 = vmatpush3.bf16.msra.mxu0 %v5075_v3  ;;  %5015 = vmatprep.subr.bf16.mxu1 %v7204_v49  ;;  %v5084_v49 = vpack.c.bf16 %v3937_v37, %v3930_v43 }
 0x1fc   : > { %5077 = vmatprep.subr.bf16.mxu0 %v5210_v47  ;;  %3794 = vmatprep.mubr.f32.mxu1 %v7718_v33 }
 0x1fd   : > { %4620 = vmatprep.mubr.msk.f32.mxu0 %vm5211_vm9, %v7718_v33 }
 0x1fe   : > { %5017 = vmatpush1.bf16.msra.mxu1 %v7218_v38 }
 0x1ff   : > { %5079 = vmatpush3.bf16.msra.mxu0 %v5078_v12  ;;  %5019 = vmatprep.subr.bf16.mxu1 %v7235_v54 }
 0x200   : > { %5080 = vmatprep.subr.bf16.mxu0 %v5210_v47 }
 0x202   : > { %5021 = vmatpush1.bf16.msra.mxu1 %v6952_v45  ;;  %v4339_v45 = vadd.f32 %v7459_v29, %v7456_v63 }
 0x203   : > { %5082 = vmatpush3.bf16.msra.mxu0 %v5081_v59  ;;  %5023 = vmatprep.subr.bf16.mxu1 %v7261_v26 }
 0x204   : > { %5083 = vmatprep.subr.bf16.mxu0 %v5210_v47 }
 0x206   : > { %5025 = vmatpush1.bf16.msra.mxu1 %v7157_v58 }
 0x207   : > { %5085 = vmatpush3.bf16.msra.mxu0 %v5084_v49 }
 0x208   : > { %5086 = vmatprep.subr.bf16.mxu0 %v5210_v47 }
 0x209   : > { %3796 = vmatmul.mubr.f32.vlgmr.msra.gmra.mrb[4].mxu1 %v5619_v1 }
 0x20a   : > { %4621 = vmatmul.mubr.f32.vlgmr.msra.gmra.mrb[4].mxu0 %v5619_v1 }
 0x20b   : > { %5088 = vmatpush3.bf16.msra.mxu0 %v7973_v10  ;;  %4639 = vmatprep.mubr.msk.f32.mxu0 %vm5211_vm9, %v7718_v33 }
 0x20c   : > { %5089 = vmatprep.subr.bf16.mxu0 %v5210_v47 }
 0x20f   : > { %5091 = vmatpush3.bf16.msra.mxu0 %v7345_v27 }
 0x210   : > { %5092 = vmatprep.subr.bf16.mxu0 %v5210_v47 }
 0x213   : > { %5094 = vmatpush3.bf16.msra.mxu0 %v7366_v51 }
 0x214   : > { %5095 = vmatprep.subr.bf16.mxu0 %v5210_v47 }
 0x217   : > { %5097 = vmatpush3.bf16.msra.mxu0 %v7384_v17 }
 0x21a   : > { %4640 = vmatmul.mubr.f32.vlgmr.msra.gmra.mrb[4].mxu0 %v5619_v1 }
 0x279   : > { %v2503_v58 = vpop.f32.mrb[2].mxu1 }
 0x27a   : > { %v4340_v38 = vadd.f32 %v4339_v45, %v2503_v58  ;;  %v2505_v33 = vpop.f32.mrb[3].mxu1 }
 0x27c   : > { %v4341_v8 = vadd.f32 %v4340_v38, %v2505_v33 }
 0x28a   : > { %v3150_v54 = vpop.f32.mrb[2].mxu0 }
 0x28b   : > { %v4342_v30 = vadd.f32 %v4341_v8, %v3150_v54  ;;  %v3152_v32 = vpop.f32.mrb[3].mxu0 }
 0x28d   : > { %v4343_v34 = vadd.f32 %v4342_v30, %v3152_v32 }
 0x2dc   : > { %v3797_v26 = vpop.f32.mrb[4].mxu1 }
 0x2dd   : > { %v4344_v4 = vadd.f32 %v4343_v34, %v3797_v26  ;;  %v3799_v50 = vpop.f32.mrb[5].mxu1 }
 0x2df   : > { %v4345_v25 = vadd.f32 %v4344_v4, %v3799_v50 }
 0x2ed   : > { %v4335_v47 = vpop.f32.mrb[4].mxu0 }
 0x2ee   : > { %v4346_v60 = vsel %vm7991_vm5, %v4335_v47, 0.0  ;;  %v4641_v14 = vpop.f32.mrb[5].mxu0 }
 0x2ef   : > { %v4347_v1 = vadd.f32 %v4346_v60, %v4345_v25 }
 0x2f1   : > { %4348 = vadd.xlane.f32.xlu0 %v4347_v1 }
 0x37e   : > { %v4349_v57 = vpop.xlane.xlu0 %4348 }
 0x37f   : > { %v4350_v52 = vmul.f32 0.0009469697, %v4349_v57 }
 0x381   : > { %v4351_v42 = vsub.f32 %v7456_v63, %v4350_v52  ;;  %v4352_v40 = vsub.f32 %v7459_v29, %v4350_v52  ;;  %v4353_v10 = vsub.f32 %v2503_v58, %v4350_v52  ;;  %v4354_v5 = vsub.f32 %v2505_v33, %v4350_v52 }
 0x382   : > { %v4355_v2 = vsub.f32 %v3150_v54, %v4350_v52  ;;  %v4356_v51 = vsub.f32 %v3152_v32, %v4350_v52  ;;  %v4357_v39 = vsub.f32 %v3797_v26, %v4350_v52  ;;  %v4359_v43 = vsub.f32 %v4335_v47, %v4350_v52 }
 0x383   : > { %v4360_v27 = vmul.f32 %v4351_v42, %v4351_v42  ;;  %v4361_v46 = vmul.f32 %v4352_v40, %v4352_v40  ;;  %v4362_v41 = vmul.f32 %v4353_v10, %v4353_v10  ;;  %v4363_v6 = vmul.f32 %v4354_v5, %v4354_v5 }
 0x384   : > { %v4364_v17 = vmul.f32 %v4355_v2, %v4355_v2  ;;  %v4358_v37 = vsub.f32 %v3799_v50, %v4350_v52  ;;  %v4365_v55 = vmul.f32 %v4356_v51, %v4356_v51  ;;  %v4366_v9 = vmul.f32 %v4357_v39, %v4357_v39 }
 0x385   : > { %v4369_v28 = vadd.f32 %v4361_v46, %v4360_v27  ;;  %v4368_v53 = vmul.f32 %v4359_v43, %v4359_v43 }
 0x386   : > { %v4367_v61 = vmul.f32 %v4358_v37, %v4358_v37 }
 0x387   : > { %v4370_v31 = vadd.f32 %v4369_v28, %v4362_v41  ;;  %v4376_v21 = vsel %vm7992_vm12, %v4368_v53, 0.0 }
 0x389   : > { %v4371_v11 = vadd.f32 %v4370_v31, %v4363_v6 }
 0x38b   : > { %v4372_v44 = vadd.f32 %v4371_v11, %v4364_v17 }
 0x38d   : > { %v4373_v13 = vadd.f32 %v4372_v44, %v4365_v55 }
 0x38f   : > { %v4374_v63 = vadd.f32 %v4373_v13, %v4366_v9 }
 0x391   : > { %v4375_v56 = vadd.f32 %v4374_v63, %v4367_v61 }
 0x393   : > { %v4377_v29 = vadd.f32 %v4376_v21, %v4375_v56 }
 0x395   : > { %4378 = vadd.xlane.f32.xlu1 %v4377_v29 }
 0x422   : > { %v4379_v36 = vpop.xlane.xlu1 %4378 }
 0x423   : > { %v4380_v22 = vmul.f32 0.0009469697, %v4379_v36 }
 0x425   : > { %v4381_v20 = vadd.f32 1e-05, %v4380_v22 }
 0x427   : > { %5181 = vrsqrt.f32 %v4381_v20 }
 0x431   : > { %v5182_v62 = vpop.eup %5181 }
 0x432   : > { %v4383_v35 = vmul.f32 %v5182_v62, %v4351_v42  ;;  %v4384_v15 = vmul.f32 %v5182_v62, %v4352_v40  ;;  %v4385_v18 = vmul.f32 %v5182_v62, %v4353_v10  ;;  %v4386_v24 = vmul.f32 %v5182_v62, %v4354_v5 }
 0x433   : > { %v4387_v48 = vmul.f32 %v5182_v62, %v4355_v2  ;;  %v4388_v0 = vmul.f32 %v5182_v62, %v4356_v51  ;;  %v4389_v7 = vmul.f32 %v5182_v62, %v4357_v39  ;;  %v4390_v16 = vmul.f32 %v5182_v62, %v4358_v37 }
 0x434   : > { %v4391_v19 = vmul.f32 %v5182_v62, %v4359_v43  ;;  %v4392_v23 = vmax.f32 %v4383_v35, 0.0  ;;  %v4393_v3 = vmax.f32 %v4384_v15, 0.0  ;;  %v4394_v12 = vmax.f32 %v4385_v18, 0.0 }
 0x435   : > { %v4395_v59 = vmax.f32 %v4386_v24, 0.0  ;;  %v4396_v49 = vmax.f32 %v4387_v48, 0.0  ;;  %v4397_v45 = vmax.f32 %v4388_v0, 0.0  ;;  %v4398_v58 = vmax.f32 %v4389_v7, 0.0 }
 0x436   : > { %v4399_v38 = vmax.f32 %v4390_v16, 0.0  ;;  %v4400_v33 = vmax.f32 %v4391_v19, 0.0  ;;  %4401 = vst [vmem:[%s143_s7] sm:$0xff] %v4392_v23  ;;  %4402 = vst [vmem:[%s143_s7 + $0x8] sm:$0xff] %v4393_v3 }
 0x437   : > { %4403 = vst [vmem:[%s143_s7 + $0x10] sm:$0xff] %v4394_v12  ;;  %4404 = vst [vmem:[%s143_s7 + $0x18] sm:$0xff] %v4395_v59 }
 0x438   : > { %4405 = vst [vmem:[%s143_s7 + $0x20] sm:$0xff] %v4396_v49  ;;  %4406 = vst [vmem:[%s143_s7 + $0x28] sm:$0xff] %v4397_v45 }
 0x439   : > { %4407 = vst [vmem:[%s143_s7 + $0x30] sm:$0xff] %v4398_v58  ;;  %4408 = vst [vmem:[%s143_s7 + $0x38] sm:$0xff] %v4399_v38 }
 0x43a   : > { %4409 = vst.msk [vmem:[%s143_s7 + $0x40] sm:$0xff] %vm7993_vm0, %v4400_v33 }
 0x43b PF: > { %s12_s9 = sadd.s32 1, %s5192_s9  }
 0x43c   : > { %p9_p4 = scmp.ge.s32.totalorder %s12_s9, 4  }
 0x43e   :  { %11 = sbr.rel (!%p9_p4) target bundleno = 1 (0x1), region = 58 }

</bundles_post_ra>
